<compile_context>
chip_gen: v6e
topology: v6e:2x2x1
jax: 0.10.0
libtpu: 0.0.40
codegen_flags: <defaults>
</compile_context>

<pallas_src>
import jax
import jax.numpy as jnp
from jax.experimental import pallas as pl
from jax.experimental.pallas import tpu as pltpu

# ---- hyper-parameters implied by the PyTorch module --------------------------
# Conv1d(100, 32, 3) => embedding dim 100;  Linear(384, 128) => 64 * 6 = 384
# => pool2 output length 6 => sequence length must be 100.
VOCAB = 50
EMB = 100                       # embedding dim == conv1 in-channels
SEQ = 100                       # sequence length (forced by fc1 = Linear(384, .))
C1, K1, POOL1 = 32, 3, 3
C2, K2, POOL2 = 64, 3, 5
L1 = SEQ - K1 + 1               # 98  conv1 output length
P1 = (L1 - POOL1) // POOL1 + 1  # 32  pool1 output length
L2 = P1 - K2 + 1                # 30  conv2 output length
P2 = (L2 - POOL2) // POOL2 + 1  # 6   pool2 output length
FLAT = C2 * P2                  # 384
HID = 128
NUM_CLASSES = 5
OUT_PAD = 128                   # lane-dense padded logits width

# Padded per-batch pitch: multiple of POOL1*POOL2 so BOTH pooling downsamples
# become single global strided gathers (pad tokens never reach a valid output).
QSEQ = 105                      # 100 real tokens + 5 pad (token id 0)
Q1 = QSEQ // POOL1              # 35 rows/batch after pool1 (32 valid + 3 junk)
Q2 = Q1 // POOL2                # 7  rows/batch after pool2 (6 valid + 1 junk)

# Geometry invariants the junk-row containment relies on (see kernel comments).
assert QSEQ >= SEQ and QSEQ % (POOL1 * POOL2) == 0
assert P1 * POOL1 <= L1         # pool1 windows only read real conv1 rows
assert P2 * POOL2 <= L2         # pool2 windows only read real conv2 rows
assert P1 <= Q1 and P2 <= Q2    # valid pooled rows fit inside the padded pitch


def cnn_kernel(tok_ref, tw_ref, b1_ref, w2_ref, b2_ref,
               fc1w_ref, fc1b_ref, fc2w_ref, fc2b_ref,
               out_ref, r1_ref, r2_ref, p2_ref):
    f32 = jnp.float32
    tb = out_ref.shape[0]          # batch tile
    n = tb * QSEQ                  # token / conv1 rows (pitch QSEQ per batch)
    m = tb * Q1                    # rows after pool1   (pitch Q1 per batch)
    q = tb * Q2                    # rows after pool2   (pitch Q2 per batch)

    # ---- embedding gather: one-hot built with a single iota compare ---------
    onehot = (jax.lax.broadcasted_iota(jnp.int32, (n, VOCAB), 1)
              == tok_ref[...]).astype(jnp.bfloat16)                 # (n, VOCAB)

    # ---- embedding + conv1 fused: tw = table @ W1_fused -> ONE matmul -------
    y1 = jnp.dot(onehot, tw_ref[...], preferred_element_type=f32)   # (n, K1*C1)
    acc1 = (y1[0:n - 2, 0:C1]
            + y1[1:n - 1, C1:2 * C1]
            + y1[2:n, 2 * C1:3 * C1])                               # (n-2, C1)
    # Valid conv1 rows per batch: 0..L1-1 (=97).  Rows >= L1 touch pad tokens /
    # the next batch but are finite and never selected by pool1 (3t+2 <= 95).
    r1_ref[pl.ds(0, n - 2), :] = jnp.maximum(acc1 + b1_ref[...], 0.0)
    r1_ref[pl.ds(n - 2, 2), :] = jnp.zeros((2, C1), f32)

    # ---- maxpool1 (window 3, stride 3): 3 global strided loads + VPU max ----
    # pitch QSEQ is a multiple of 3, so per-batch row b*QSEQ + 3t + phase is one
    # global stride-3 pattern; per-batch rows t in [P1, Q1) are junk.
    p1 = jnp.maximum(
        jnp.maximum(r1_ref[pl.ds(0, m, stride=POOL1), :],
                    r1_ref[pl.ds(1, m, stride=POOL1), :]),
        r1_ref[pl.ds(2, m, stride=POOL1), :])                       # (m, C1) f32
    # dropout1: identity at inference

    # ---- conv2: 3 taps fused along the lane axis -> ONE matmul --------------
    y2 = jnp.dot(p1.astype(jnp.bfloat16), w2_ref[...],
                 preferred_element_type=f32)                        # (m, K2*C2)
    acc2 = (y2[0:m - 2, 0:C2]
            + y2[1:m - 1, C2:2 * C2]
            + y2[2:m, 2 * C2:3 * C2])                               # (m-2, C2)
    # Valid conv2 rows per batch: 0..L2-1 (=29); they only read valid pool1
    # rows (<= P1-1 = 31).  Rows >= L2 are junk and never selected by pool2.
    r2_ref[pl.ds(0, m - 2), :] = jnp.maximum(acc2 + b2_ref[...], 0.0)
    r2_ref[pl.ds(m - 2, 2), :] = jnp.zeros((2, C2), f32)

    # ---- maxpool2 (window 5, stride 5): 5 global strided loads + VPU max ----
    p2 = r2_ref[pl.ds(0, q, stride=POOL2), :]
    for ph in range(1, POOL2):
        p2 = jnp.maximum(p2, r2_ref[pl.ds(ph, q, stride=POOL2), :])  # (q, C2)
    p2_ref[...] = p2
    # dropout2: identity at inference

    # ---- flatten (torch channel-major order absorbed into fc1 weight) + fc1 --
    # Row b*Q2 + t of p2_ref holds pool2[b, :, t]; a stride-Q2 gather per time
    # step t yields a (tb, C2) chunk -> lane-concat to (tb, P2*C2).
    flat = jnp.concatenate(
        [p2_ref[pl.ds(t, tb, stride=Q2), :] for t in range(P2)], axis=1)
    h = jnp.maximum(
        jnp.dot(flat.astype(jnp.bfloat16), fc1w_ref[...],
                preferred_element_type=f32) + fc1b_ref[...], 0.0)   # (tb, HID)

    # ---- fc2 (128 output lanes -> lane-dense store) --------------------------
    out_ref[...] = (jnp.dot(h.astype(jnp.bfloat16), fc2w_ref[...],
                            preferred_element_type=f32) + fc2b_ref[...])


def _pick_batch_tile(B, block_b):
    """Batch tile: multiple of 8 sublanes when the grid has >1 step (BlockSpec
    tiling rule); aim for >= 2 grid steps so v7x shards tiles on both TCs."""
    block_b = max(8, (block_b // 8) * 8)
    if B < 16:
        return B                       # single tile: block dims == array dims
    return max(8, min(block_b, (B // 2 // 8) * 8))


def cnn_forward_pallas(tokens, p, block_b=32):
    B = tokens.shape[0]
    tb = _pick_batch_tile(B, block_b)
    b_pad = pl.cdiv(B, tb) * tb
    if b_pad != B:
        tokens = jnp.pad(tokens, ((0, b_pad - B), (0, 0)))
    n_tiles = b_pad // tb

    # Pad every sequence to pitch QSEQ with token 0; padded rows only feed
    # pooled rows that the kernel discards.
    tok_flat = jnp.pad(tokens.astype(jnp.int32),
                       ((0, 0), (0, QSEQ - SEQ))).reshape(b_pad * QSEQ, 1)

    f32, bf16 = jnp.float32, jnp.bfloat16
    # Conv weights in (C_in, K*C_out) fused-tap layout.
    w1f = jnp.transpose(p["conv1_w"].astype(f32), (1, 2, 0)).reshape(EMB, K1 * C1)
    w2f = jnp.transpose(p["conv2_w"].astype(f32), (1, 2, 0)).reshape(C1, K2 * C2).astype(bf16)
    # Fold the frozen embedding table into conv1: kernel does one-hot @ tw.
    tw = jnp.dot(p["embedding"].astype(f32), w1f, precision="highest").astype(bf16)
    b1 = p["conv1_b"].reshape(1, C1).astype(f32)
    b2 = p["conv2_b"].reshape(1, C2).astype(f32)
    # fc1 reordered so the kernel's flatten index t*C2 + c matches torch's c*P2 + t.
    fc1w = jnp.transpose(p["fc1_w"].reshape(HID, C2, P2), (2, 1, 0)).reshape(FLAT, HID).astype(bf16)
    fc1b = p["fc1_b"].reshape(1, HID).astype(f32)
    # fc2 padded to 128 output lanes for a lane-dense store.
    ncls = p["fc2_w"].shape[0]
    fc2w = jnp.zeros((HID, OUT_PAD), bf16).at[:, :ncls].set(p["fc2_w"].T.astype(bf16))
    fc2b = jnp.zeros((1, OUT_PAD), f32).at[0, :ncls].set(p["fc2_b"].astype(f32))

    out = pl.pallas_call(
        cnn_kernel,
        out_shape=jax.ShapeDtypeStruct((b_pad, OUT_PAD), jnp.float32),
        grid=(n_tiles,),
        in_specs=[
            pl.BlockSpec((tb * QSEQ, 1), lambda i: (i, 0)),      # tokens (per-step DMA)
            pl.BlockSpec((VOCAB, K1 * C1), lambda i: (0, 0)),    # table@conv1 (resident)
            pl.BlockSpec((1, C1), lambda i: (0, 0)),
            pl.BlockSpec((C1, K2 * C2), lambda i: (0, 0)),
            pl.BlockSpec((1, C2), lambda i: (0, 0)),
            pl.BlockSpec((FLAT, HID), lambda i: (0, 0)),
            pl.BlockSpec((1, HID), lambda i: (0, 0)),
            pl.BlockSpec((HID, OUT_PAD), lambda i: (0, 0)),
            pl.BlockSpec((1, OUT_PAD), lambda i: (0, 0)),
        ],
        out_specs=pl.BlockSpec((tb, OUT_PAD), lambda i: (i, 0)),
        scratch_shapes=[
            pltpu.VMEM((tb * QSEQ, C1), jnp.float32),   # conv1+relu, pitch QSEQ
            pltpu.VMEM((tb * Q1, C2), jnp.float32),     # conv2+relu, pitch Q1
            pltpu.VMEM((tb * Q2, C2), jnp.float32),     # pool2 out,  pitch Q2
        ],
        compiler_params=pltpu.CompilerParams(
            dimension_semantics=("parallel",),
            vmem_limit_bytes=32 * 1024 * 1024,
        ),
    )(tok_flat, tw, b1, w2f, b2, fc1w, fc1b, fc2w, fc2b)
    return out[:B, :ncls]


# ---- pure-JAX reference (mirrors the PyTorch forward exactly) -----------------
def reference_forward(tokens, p):
    emb = p["embedding"][tokens].astype(jnp.float32)             # (B, SEQ, EMB)

    def conv1d(x, w, b):                                         # x (B,L,Cin), w (Cout,Cin,K)
        K = w.shape[-1]
        Lout = x.shape[1] - K + 1
        acc = jnp.zeros((x.shape[0], Lout, w.shape[0]), jnp.float32)
        for k in range(K):
            acc = acc + jnp.einsum("blc,oc->blo", x[:, k:k + Lout, :], w[:, :, k])
        return acc + b[None, None, :]

    y = jax.nn.relu(conv1d(emb, p["conv1_w"], p["conv1_b"]))     # (B, 98, 32)
    y = y[:, :P1 * POOL1, :].reshape(y.shape[0], P1, POOL1, C1).max(axis=2)
    y = jax.nn.relu(conv1d(y, p["conv2_w"], p["conv2_b"]))       # (B, 30, 64)
    y = y[:, :P2 * POOL2, :].reshape(y.shape[0], P2, POOL2, C2).max(axis=2)
    flat = jnp.transpose(y, (0, 2, 1)).reshape(y.shape[0], FLAT)  # torch flatten order
    h = jax.nn.relu(flat @ p["fc1_w"].T + p["fc1_b"])
    return h @ p["fc2_w"].T + p["fc2_b"]


if __name__ == "__main__":
    key = jax.random.PRNGKey(0)
    ks = jax.random.split(key, 10)
    params = {
        "embedding": jax.random.normal(ks[0], (VOCAB, EMB), jnp.float32) * 0.5,
        "conv1_w": jax.random.normal(ks[1], (C1, EMB, K1), jnp.float32) * 0.05,
        "conv1_b": jax.random.normal(ks[2], (C1,), jnp.float32) * 0.05,
        "conv2_w": jax.random.normal(ks[3], (C2, C1, K2), jnp.float32) * 0.05,
        "conv2_b": jax.random.normal(ks[4], (C2,), jnp.float32) * 0.05,
        "fc1_w": jax.random.normal(ks[5], (HID, FLAT), jnp.float32) * 0.05,
        "fc1_b": jax.random.normal(ks[6], (HID,), jnp.float32) * 0.05,
        "fc2_w": jax.random.normal(ks[7], (NUM_CLASSES, HID), jnp.float32) * 0.05,
        "fc2_b": jax.random.normal(ks[8], (NUM_CLASSES,), jnp.float32) * 0.05,
    }
    tokens = jax.random.randint(ks[9], (2, SEQ), 0, VOCAB, dtype=jnp.int32)

    fwd = jax.jit(cnn_forward_pallas)
    out = jax.block_until_ready(fwd(tokens, params))

    ref = jax.block_until_ready(reference_forward(tokens, params))
    max_diff = float(jnp.max(jnp.abs(out - ref)))
    assert out.shape == (2, NUM_CLASSES), out.shape
    assert max_diff < 5e-2, f"kernel/reference mismatch: {max_diff}"

    print("KERNEL_OK")
</pallas_src>

<mosaic_0001>
module attributes {stable_mosaic.version = 11 : i64} {
  func.func @cnn_kernel(%arg0: i32, %arg1: memref<210x1xi32, #tpu.memory_space<vmem>>, %arg2: memref<50x96xbf16, #tpu.memory_space<vmem>>, %arg3: memref<1x32xf32, #tpu.memory_space<vmem>>, %arg4: memref<32x192xbf16, #tpu.memory_space<vmem>>, %arg5: memref<1x64xf32, #tpu.memory_space<vmem>>, %arg6: memref<384x128xbf16, #tpu.memory_space<vmem>>, %arg7: memref<1x128xf32, #tpu.memory_space<vmem>>, %arg8: memref<128x128xbf16, #tpu.memory_space<vmem>>, %arg9: memref<1x128xf32, #tpu.memory_space<vmem>>, %arg10: memref<2x128xf32, #tpu.memory_space<vmem>>, %arg11: memref<210x32xf32, #tpu.memory_space<vmem>>, %arg12: memref<70x64xf32, #tpu.memory_space<vmem>>, %arg13: memref<14x64xf32, #tpu.memory_space<vmem>>) attributes {dimension_semantics = [#tpu.dimension_semantics<parallel>], iteration_bounds = array<i64: 1>, scalar_prefetch = 0 : i64, scratch_operands = 3 : i64, tpu.core_type = #tpu.core_type<tc>, window_params = [{transform_indices = @transform_0, window_bounds = array<i64: 210, 1>}, {pipeline_mode = #tpu.pipeline_mode<synchronous>, transform_indices = @transform_1, window_bounds = array<i64: 50, 96>}, {pipeline_mode = #tpu.pipeline_mode<synchronous>, transform_indices = @transform_2, window_bounds = array<i64: 1, 32>}, {pipeline_mode = #tpu.pipeline_mode<synchronous>, transform_indices = @transform_3, window_bounds = array<i64: 32, 192>}, {pipeline_mode = #tpu.pipeline_mode<synchronous>, transform_indices = @transform_4, window_bounds = array<i64: 1, 64>}, {pipeline_mode = #tpu.pipeline_mode<synchronous>, transform_indices = @transform_5, window_bounds = array<i64: 384, 128>}, {pipeline_mode = #tpu.pipeline_mode<synchronous>, transform_indices = @transform_6, window_bounds = array<i64: 1, 128>}, {pipeline_mode = #tpu.pipeline_mode<synchronous>, transform_indices = @transform_7, window_bounds = array<i64: 128, 128>}, {pipeline_mode = #tpu.pipeline_mode<synchronous>, transform_indices = @transform_8, window_bounds = array<i64: 1, 128>}, {transform_indices = @transform_9, window_bounds = array<i64: 2, 128>}]} {
    %0 = tpu.iota {dimensions = array<i32: 1>} : vector<210x50xi32>
    %c0 = arith.constant 0 : index
    %c0_0 = arith.constant 0 : index
    %1 = vector.load %arg1[%c0, %c0_0] : memref<210x1xi32, #tpu.memory_space<vmem>>, vector<210x1xi32>
    %2 = vector.broadcast %1 : vector<210x1xi32> to vector<210x50xi32>
    %3 = arith.cmpi eq, %0, %2 : vector<210x50xi32>
    %4 = arith.extui %3 : vector<210x50xi1> to vector<210x50xi32>
    %5 = arith.sitofp %4 : vector<210x50xi32> to vector<210x50xf32>
    %6 = arith.truncf %5 : vector<210x50xf32> to vector<210x50xbf16>
    %c0_1 = arith.constant 0 : index
    %c0_2 = arith.constant 0 : index
    %7 = vector.load %arg2[%c0_1, %c0_2] : memref<50x96xbf16, #tpu.memory_space<vmem>>, vector<50x96xbf16>
    %cst = arith.constant dense<0.000000e+00> : vector<210x96xf32>
    %8 = tpu.matmul %6, %7, %cst {dimension_numbers = #tpu.dot_dimension_numbers<[1], [0], [0], [1], [0, 0, 1, 1], [], []>} : vector<210x50xbf16>, vector<50x96xbf16>, vector<210x96xf32> -> vector<210x96xf32>
    %9 = vector.extract_strided_slice %8 {offsets = [0, 0], sizes = [208, 32], strides = [1, 1]} : vector<210x96xf32> to vector<208x32xf32>
    %10 = vector.extract_strided_slice %8 {offsets = [1, 32], sizes = [208, 32], strides = [1, 1]} : vector<210x96xf32> to vector<208x32xf32>
    %11 = arith.addf %9, %10 : vector<208x32xf32>
    %12 = vector.extract_strided_slice %8 {offsets = [2, 64], sizes = [208, 32], strides = [1, 1]} : vector<210x96xf32> to vector<208x32xf32>
    %13 = arith.addf %11, %12 : vector<208x32xf32>
    %c0_3 = arith.constant 0 : index
    %c0_4 = arith.constant 0 : index
    %14 = vector.load %arg3[%c0_3, %c0_4] : memref<1x32xf32, #tpu.memory_space<vmem>>, vector<1x32xf32>
    %15 = vector.broadcast %14 : vector<1x32xf32> to vector<208x32xf32>
    %16 = arith.addf %13, %15 : vector<208x32xf32>
    %cst_5 = arith.constant 0.000000e+00 : f32
    %17 = vector.broadcast %cst_5 : f32 to vector<208x32xf32>
    %18 = arith.maximumf %16, %17 : vector<208x32xf32>
    %c0_6 = arith.constant 0 : index
    %c0_7 = arith.constant 0 : index
    %19 = vector.load %arg11[%c0_6, %c0_7] : memref<210x32xf32, #tpu.memory_space<vmem>>, vector<208x32xf32>
    tpu.vector_store %arg11[%c0_6, %c0_7], %18 {strides = array<i32>} : memref<210x32xf32, #tpu.memory_space<vmem>>, vector<208x32xf32>,
    %cst_8 = arith.constant 0.000000e+00 : f32
    %20 = vector.broadcast %cst_8 : f32 to vector<2x32xf32>
    %c208 = arith.constant 208 : index
    %c0_9 = arith.constant 0 : index
    %21 = vector.load %arg11[%c208, %c0_9] : memref<210x32xf32, #tpu.memory_space<vmem>>, vector<2x32xf32>
    tpu.vector_store %arg11[%c208, %c0_9], %20 {strides = array<i32>} : memref<210x32xf32, #tpu.memory_space<vmem>>, vector<2x32xf32>,
    %c0_10 = arith.constant 0 : index
    %c0_11 = arith.constant 0 : index
    %22 = tpu.strided_load %arg11[%c0_10, %c0_11] {strides = array<i32: 3, 1>} : memref<210x32xf32, #tpu.memory_space<vmem>>, vector<70x32xf32>
    %c1 = arith.constant 1 : index
    %c0_12 = arith.constant 0 : index
    %23 = tpu.strided_load %arg11[%c1, %c0_12] {strides = array<i32: 3, 1>} : memref<210x32xf32, #tpu.memory_space<vmem>>, vector<70x32xf32>
    %24 = arith.maximumf %22, %23 : vector<70x32xf32>
    %c2 = arith.constant 2 : index
    %c0_13 = arith.constant 0 : index
    %25 = tpu.strided_load %arg11[%c2, %c0_13] {strides = array<i32: 3, 1>} : memref<210x32xf32, #tpu.memory_space<vmem>>, vector<70x32xf32>
    %26 = arith.maximumf %24, %25 : vector<70x32xf32>
    %27 = arith.truncf %26 : vector<70x32xf32> to vector<70x32xbf16>
    %c0_14 = arith.constant 0 : index
    %c0_15 = arith.constant 0 : index
    %28 = vector.load %arg4[%c0_14, %c0_15] : memref<32x192xbf16, #tpu.memory_space<vmem>>, vector<32x192xbf16>
    %cst_16 = arith.constant dense<0.000000e+00> : vector<70x192xf32>
    %29 = tpu.matmul %27, %28, %cst_16 {dimension_numbers = #tpu.dot_dimension_numbers<[1], [0], [0], [1], [0, 0, 1, 1], [], []>} : vector<70x32xbf16>, vector<32x192xbf16>, vector<70x192xf32> -> vector<70x192xf32>
    %30 = vector.extract_strided_slice %29 {offsets = [0, 0], sizes = [68, 64], strides = [1, 1]} : vector<70x192xf32> to vector<68x64xf32>
    %31 = vector.extract_strided_slice %29 {offsets = [1, 64], sizes = [68, 64], strides = [1, 1]} : vector<70x192xf32> to vector<68x64xf32>
    %32 = arith.addf %30, %31 : vector<68x64xf32>
    %33 = vector.extract_strided_slice %29 {offsets = [2, 128], sizes = [68, 64], strides = [1, 1]} : vector<70x192xf32> to vector<68x64xf32>
    %34 = arith.addf %32, %33 : vector<68x64xf32>
    %c0_17 = arith.constant 0 : index
    %c0_18 = arith.constant 0 : index
    %35 = vector.load %arg5[%c0_17, %c0_18] : memref<1x64xf32, #tpu.memory_space<vmem>>, vector<1x64xf32>
    %36 = vector.broadcast %35 : vector<1x64xf32> to vector<68x64xf32>
    %37 = arith.addf %34, %36 : vector<68x64xf32>
    %cst_19 = arith.constant 0.000000e+00 : f32
    %38 = vector.broadcast %cst_19 : f32 to vector<68x64xf32>
    %39 = arith.maximumf %37, %38 : vector<68x64xf32>
    %c0_20 = arith.constant 0 : index
    %c0_21 = arith.constant 0 : index
    %40 = vector.load %arg12[%c0_20, %c0_21] : memref<70x64xf32, #tpu.memory_space<vmem>>, vector<68x64xf32>
    tpu.vector_store %arg12[%c0_20, %c0_21], %39 {strides = array<i32>} : memref<70x64xf32, #tpu.memory_space<vmem>>, vector<68x64xf32>,
    %cst_22 = arith.constant 0.000000e+00 : f32
    %41 = vector.broadcast %cst_22 : f32 to vector<2x64xf32>
    %c68 = arith.constant 68 : index
    %c0_23 = arith.constant 0 : index
    %42 = vector.load %arg12[%c68, %c0_23] : memref<70x64xf32, #tpu.memory_space<vmem>>, vector<2x64xf32>
    tpu.vector_store %arg12[%c68, %c0_23], %41 {strides = array<i32>} : memref<70x64xf32, #tpu.memory_space<vmem>>, vector<2x64xf32>,
    %c0_24 = arith.constant 0 : index
    %c0_25 = arith.constant 0 : index
    %43 = tpu.strided_load %arg12[%c0_24, %c0_25] {strides = array<i32: 5, 1>} : memref<70x64xf32, #tpu.memory_space<vmem>>, vector<14x64xf32>
    %c1_26 = arith.constant 1 : index
    %c0_27 = arith.constant 0 : index
    %44 = tpu.strided_load %arg12[%c1_26, %c0_27] {strides = array<i32: 5, 1>} : memref<70x64xf32, #tpu.memory_space<vmem>>, vector<14x64xf32>
    %45 = arith.maximumf %43, %44 : vector<14x64xf32>
    %c2_28 = arith.constant 2 : index
    %c0_29 = arith.constant 0 : index
    %46 = tpu.strided_load %arg12[%c2_28, %c0_29] {strides = array<i32: 5, 1>} : memref<70x64xf32, #tpu.memory_space<vmem>>, vector<14x64xf32>
    %47 = arith.maximumf %45, %46 : vector<14x64xf32>
    %c3 = arith.constant 3 : index
    %c0_30 = arith.constant 0 : index
    %48 = tpu.strided_load %arg12[%c3, %c0_30] {strides = array<i32: 5, 1>} : memref<70x64xf32, #tpu.memory_space<vmem>>, vector<14x64xf32>
    %49 = arith.maximumf %47, %48 : vector<14x64xf32>
    %c4 = arith.constant 4 : index
    %c0_31 = arith.constant 0 : index
    %50 = tpu.strided_load %arg12[%c4, %c0_31] {strides = array<i32: 5, 1>} : memref<70x64xf32, #tpu.memory_space<vmem>>, vector<14x64xf32>
    %51 = arith.maximumf %49, %50 : vector<14x64xf32>
    %c0_32 = arith.constant 0 : index
    %c0_33 = arith.constant 0 : index
    %52 = vector.load %arg13[%c0_32, %c0_33] : memref<14x64xf32, #tpu.memory_space<vmem>>, vector<14x64xf32>
    tpu.vector_store %arg13[%c0_32, %c0_33], %51 {strides = array<i32>} : memref<14x64xf32, #tpu.memory_space<vmem>>, vector<14x64xf32>,
    %c0_34 = arith.constant 0 : index
    %c0_35 = arith.constant 0 : index
    %53 = tpu.strided_load %arg13[%c0_34, %c0_35] {strides = array<i32: 7, 1>} : memref<14x64xf32, #tpu.memory_space<vmem>>, vector<2x64xf32>
    %c1_36 = arith.constant 1 : index
    %c0_37 = arith.constant 0 : index
    %54 = tpu.strided_load %arg13[%c1_36, %c0_37] {strides = array<i32: 7, 1>} : memref<14x64xf32, #tpu.memory_space<vmem>>, vector<2x64xf32>
    %c2_38 = arith.constant 2 : index
    %c0_39 = arith.constant 0 : index
    %55 = tpu.strided_load %arg13[%c2_38, %c0_39] {strides = array<i32: 7, 1>} : memref<14x64xf32, #tpu.memory_space<vmem>>, vector<2x64xf32>
    %c3_40 = arith.constant 3 : index
    %c0_41 = arith.constant 0 : index
    %56 = tpu.strided_load %arg13[%c3_40, %c0_41] {strides = array<i32: 7, 1>} : memref<14x64xf32, #tpu.memory_space<vmem>>, vector<2x64xf32>
    %c4_42 = arith.constant 4 : index
    %c0_43 = arith.constant 0 : index
    %57 = tpu.strided_load %arg13[%c4_42, %c0_43] {strides = array<i32: 7, 1>} : memref<14x64xf32, #tpu.memory_space<vmem>>, vector<2x64xf32>
    %c5 = arith.constant 5 : index
    %c0_44 = arith.constant 0 : index
    %58 = tpu.strided_load %arg13[%c5, %c0_44] {strides = array<i32: 7, 1>} : memref<14x64xf32, #tpu.memory_space<vmem>>, vector<2x64xf32>
    %59 = tpu.concatenate %53, %54, %55, %56, %57, %58 in 1 : vector<2x64xf32>, vector<2x64xf32>, vector<2x64xf32>, vector<2x64xf32>, vector<2x64xf32>, vector<2x64xf32> -> vector<2x384xf32>
    %60 = arith.truncf %59 : vector<2x384xf32> to vector<2x384xbf16>
    %c0_45 = arith.constant 0 : index
    %c0_46 = arith.constant 0 : index
    %61 = vector.load %arg6[%c0_45, %c0_46] : memref<384x128xbf16, #tpu.memory_space<vmem>>, vector<384x128xbf16>
    %cst_47 = arith.constant dense<0.000000e+00> : vector<2x128xf32>
    %62 = tpu.matmul %60, %61, %cst_47 {dimension_numbers = #tpu.dot_dimension_numbers<[1], [0], [0], [1], [0, 0, 1, 1], [], []>} : vector<2x384xbf16>, vector<384x128xbf16>, vector<2x128xf32> -> vector<2x128xf32>
    %c0_48 = arith.constant 0 : index
    %c0_49 = arith.constant 0 : index
    %63 = vector.load %arg7[%c0_48, %c0_49] : memref<1x128xf32, #tpu.memory_space<vmem>>, vector<1x128xf32>
    %64 = vector.broadcast %63 : vector<1x128xf32> to vector<2x128xf32>
    %65 = arith.addf %62, %64 : vector<2x128xf32>
    %cst_50 = arith.constant 0.000000e+00 : f32
    %66 = vector.broadcast %cst_50 : f32 to vector<2x128xf32>
    %67 = arith.maximumf %65, %66 : vector<2x128xf32>
    %68 = arith.truncf %67 : vector<2x128xf32> to vector<2x128xbf16>
    %c0_51 = arith.constant 0 : index
    %c0_52 = arith.constant 0 : index
    %69 = vector.load %arg8[%c0_51, %c0_52] : memref<128x128xbf16, #tpu.memory_space<vmem>>, vector<128x128xbf16>
    %cst_53 = arith.constant dense<0.000000e+00> : vector<2x128xf32>
    %70 = tpu.matmul %68, %69, %cst_53 {dimension_numbers = #tpu.dot_dimension_numbers<[1], [0], [0], [1], [0, 0, 1, 1], [], []>} : vector<2x128xbf16>, vector<128x128xbf16>, vector<2x128xf32> -> vector<2x128xf32>
    %c0_54 = arith.constant 0 : index
    %c0_55 = arith.constant 0 : index
    %71 = vector.load %arg9[%c0_54, %c0_55] : memref<1x128xf32, #tpu.memory_space<vmem>>, vector<1x128xf32>
    %72 = vector.broadcast %71 : vector<1x128xf32> to vector<2x128xf32>
    %73 = arith.addf %70, %72 : vector<2x128xf32>
    %c0_56 = arith.constant 0 : index
    %c0_57 = arith.constant 0 : index
    %74 = vector.load %arg10[%c0_56, %c0_57] : memref<2x128xf32, #tpu.memory_space<vmem>>, vector<2x128xf32>
    tpu.vector_store %arg10[%c0_56, %c0_57], %73 {strides = array<i32>} : memref<2x128xf32, #tpu.memory_space<vmem>>, vector<2x128xf32>,
    return
  }
  func.func @transform_0(%arg0: i32) -> (i32, i32) {
    %c0_i32 = arith.constant 0 : i32
    %c0_i32_0 = arith.constant 0 : i32
    return %arg0, %c0_i32 : i32, i32
  }
  func.func @transform_1(%arg0: i32) -> (i32, i32) {
    %c0_i32 = arith.constant 0 : i32
    %c0_i32_0 = arith.constant 0 : i32
    %c0_i32_1 = arith.constant 0 : i32
    return %c0_i32, %c0_i32_0 : i32, i32
  }
  func.func @transform_2(%arg0: i32) -> (i32, i32) {
    %c0_i32 = arith.constant 0 : i32
    %c0_i32_0 = arith.constant 0 : i32
    %c0_i32_1 = arith.constant 0 : i32
    return %c0_i32, %c0_i32_0 : i32, i32
  }
  func.func @transform_3(%arg0: i32) -> (i32, i32) {
    %c0_i32 = arith.constant 0 : i32
    %c0_i32_0 = arith.constant 0 : i32
    %c0_i32_1 = arith.constant 0 : i32
    return %c0_i32, %c0_i32_0 : i32, i32
  }
  func.func @transform_4(%arg0: i32) -> (i32, i32) {
    %c0_i32 = arith.constant 0 : i32
    %c0_i32_0 = arith.constant 0 : i32
    %c0_i32_1 = arith.constant 0 : i32
    return %c0_i32, %c0_i32_0 : i32, i32
  }
  func.func @transform_5(%arg0: i32) -> (i32, i32) {
    %c0_i32 = arith.constant 0 : i32
    %c0_i32_0 = arith.constant 0 : i32
    %c0_i32_1 = arith.constant 0 : i32
    return %c0_i32, %c0_i32_0 : i32, i32
  }
  func.func @transform_6(%arg0: i32) -> (i32, i32) {
    %c0_i32 = arith.constant 0 : i32
    %c0_i32_0 = arith.constant 0 : i32
    %c0_i32_1 = arith.constant 0 : i32
    return %c0_i32, %c0_i32_0 : i32, i32
  }
  func.func @transform_7(%arg0: i32) -> (i32, i32) {
    %c0_i32 = arith.constant 0 : i32
    %c0_i32_0 = arith.constant 0 : i32
    %c0_i32_1 = arith.constant 0 : i32
    return %c0_i32, %c0_i32_0 : i32, i32
  }
  func.func @transform_8(%arg0: i32) -> (i32, i32) {
    %c0_i32 = arith.constant 0 : i32
    %c0_i32_0 = arith.constant 0 : i32
    %c0_i32_1 = arith.constant 0 : i32
    return %c0_i32, %c0_i32_0 : i32, i32
  }
  func.func @transform_9(%arg0: i32) -> (i32, i32) {
    %c0_i32 = arith.constant 0 : i32
    %c0_i32_0 = arith.constant 0 : i32
    return %arg0, %c0_i32 : i32, i32
  }
}

</mosaic_0001>

<bundles_post_ra>
// kernel: cnn_forward_pallas.1
= control target key start
LH: loop header
LB: loop body
LE: loop exit
PB: predicated region body
PF: predicated region fallthrough
CT: control target
= control target key end

     0   :  { %v1997_v2 = vmov 0   ;;  %vm310_vm0 = vcmask 1040384   ;;  %v1998_v22 = vmov 0.0   ;;  %s2782_s0 = inlined_call_operand.vmem [shape: s32[210,1], index: 0, kind: input, shape index: {}]   ;;  %s2783_s1 = inlined_call_operand.vmem [shape: bf16[50,96], index: 1, kind: input, shape index: {}]   ;;  %s2784_s2 = inlined_call_operand.vmem [shape: f32[1,32], index: 2, kind: input, shape index: {}]   ;;  %s2785_s3 = inlined_call_operand.vmem [shape: bf16[32,192], index: 3, kind: input, shape index: {}]   ;;  %s2786_s4 = inlined_call_operand.vmem [shape: f32[1,64], index: 4, kind: input, shape index: {}]   ;;  %s2787_s5 = inlined_call_operand.vmem [shape: bf16[384,128], index: 5, kind: input, shape index: {}]   ;;  %s2788_s6 = inlined_call_operand.vmem [shape: f32[1,128], index: 6, kind: input, shape index: {}]   ;;  %s2789_s7 = inlined_call_operand.vmem [shape: bf16[128,128], index: 7, kind: input, shape index: {}]   ;;  %s2790_s8 = inlined_call_operand.vmem [shape: f32[1,128], index: 8, kind: input, shape index: {}]   ;;  %s2791_s9 = inlined_call_operand.hbm [shape: f32[2,128], index: 9, kind: output, shape index: {}]  }
   0x1   :  { %v38_v0 = vld [vmem:[%s2782_s0 + $0x10] sm:$0xff]  ;;  %v36_v1 = vld [vmem:[%s2782_s0] sm:$0xff]  ;;  %1927 = vset.pattern.permute.xlu1 %v1997_v2  ;;  %1926 = vset.pattern.permute.xlu0 %v1997_v2  ;;  %v39_v3 = vld [vmem:[%s2782_s0 + $0x18] sm:$0xff] }
   0x2   :  { %70 = vperm.xlu1 %1927, %v38_v0   ;;  %64 = vperm.xlu0 %1926, %v36_v1   ;;  %v37_v4 = vld [vmem:[%s2782_s0 + $0x8] sm:$0xff]  ;;  %v40_v6 = vld [vmem:[%s2782_s0 + $0x20] sm:$0xff]  ;;  %v43_v7 = vld [vmem:[%s2782_s0 + $0x38] sm:$0xff] }
   0x3   :  { %1036 = vmatprep.mubr.bf16.mxu1 %v1997_v2  ;;  %v41_v5 = vld [vmem:[%s2782_s0 + $0x28] sm:$0xff]  ;;  %v1933_v8 = vld [vmem:[%s2783_s1 + $0x18] ss:$0 sps:$4 sm:$0x11]   ;;  %v1934_v9 = vld [vmem:[%s2783_s1 + $0x10] sm:$0xff]  }
   0x4   :  { %v42_v10 = vld [vmem:[%s2782_s0 + $0x30] sm:$0xff]  ;;  %1919 = vmatprep.subr.msk.bf16.mxu0 %vm310_vm0, %v1933_v8  ;;  %v312_v11 = vsel %vm310_vm0, %v1933_v8, 0  ;;  %v1935_v12 = vld [vmem:[%s2783_s1 + $0x8] sm:$0xff]   ;;  %v44_v14 = vld [vmem:[%s2782_s0 + $0x40] sm:$0xff] }
   0x5   :  { %1844 = vmatpush3.bf16.msra.mxu0 %v312_v11  ;;  %v45_v13 = vld [vmem:[%s2782_s0 + $0x48] sm:$0xff]  ;;  %v1936_v15 = vld [vmem:[%s2783_s1] sm:$0xff]   ;;  %v47_v16 = vld [vmem:[%s2782_s0 + $0x58] sm:$0xff] }
   0x6   :  { %73 = vperm.xlu1 %1927, %v39_v3   ;;  %67 = vperm.xlu0 %1926, %v37_v4   ;;  %v46_v17 = vld [vmem:[%s2782_s0 + $0x50] sm:$0xff]  ;;  %v49_v18 = vld [vmem:[%s2782_s0 + $0x68] sm:$0xff]  ;;  %v48_v19 = vld [vmem:[%s2782_s0 + $0x60] sm:$0xff] }
   0x7   :  { %1845 = vmatprep.subr.bf16.mxu0 %v1934_v9  ;;  %v51_v20 = vld [vmem:[%s2782_s0 + $0x78] sm:$0xff]  ;;  %v50_v21 = vld [vmem:[%s2782_s0 + $0x70] sm:$0xff]  ;;  %v53_v23 = vld [vmem:[%s2782_s0 + $0x88] sm:$0xff] }
   0x8   :  { %v52_v24 = vld [vmem:[%s2782_s0 + $0x80] sm:$0xff]  ;;  %v55_v25 = vld [vmem:[%s2782_s0 + $0x98] sm:$0xff]  ;;  %v54_v26 = vld [vmem:[%s2782_s0 + $0x90] sm:$0xff] }
   0x9   :  { %1846 = vmatpush3.bf16.msra.mxu0 %v1934_v9 }
   0xa   :  { %79 = vperm.xlu1 %1927, %v41_v5   ;;  %76 = vperm.xlu0 %1926, %v40_v6  }
   0xb   :  { %1847 = vmatprep.subr.bf16.mxu0 %v1935_v12 }
   0xd   :  { %1848 = vmatpush3.bf16.msra.mxu0 %v1935_v12 }
   0xe   :  { %85 = vperm.xlu1 %1927, %v43_v7   ;;  %82 = vperm.xlu0 %1926, %v42_v10  }
   0xf   :  { %1849 = vmatprep.subr.bf16.mxu0 %v1936_v15 }
  0x11   :  { %1850 = vmatpush3.bf16.msra.mxu0 %v1936_v15 }
  0x12   :  { %91 = vperm.xlu1 %1927, %v45_v13   ;;  %88 = vperm.xlu0 %1926, %v44_v14  }
  0x13   :  { %1879 = vmatprep.subr.bf16.mxu0 %v1998_v22 }
  0x16   :  { %97 = vperm.xlu1 %1927, %v47_v16   ;;  %94 = vperm.xlu0 %1926, %v46_v17  }
  0x1a   :  { %103 = vperm.xlu1 %1927, %v49_v18   ;;  %100 = vperm.xlu0 %1926, %v48_v19  }
  0x1e   :  { %109 = vperm.xlu1 %1927, %v51_v20   ;;  %106 = vperm.xlu0 %1926, %v50_v21  }
  0x22   :  { %115 = vperm.xlu1 %1927, %v53_v23   ;;  %112 = vperm.xlu0 %1926, %v52_v24  }
  0x23   :  { %14 = vsyncpa [#allocation6], 0  ;;  %v57_v27 = vld [vmem:[%s2782_s0 + $0xa8] sm:$0xff]  ;;  %v56_v28 = vld [vmem:[%s2782_s0 + $0xa0] sm:$0xff]  ;;  %v34_v34 = vlaneseq  ;;  %vm267_vm5 = vcmask 408576   ;;  %s2000_s27 = smov 64  }
  0x24   :  { %v59_v29 = vld [vmem:[%s2782_s0 + $0xb8] sm:$0xff]  ;;  %v58_v30 = vld [vmem:[%s2782_s0 + $0xb0] sm:$0xff]  ;;  %v61_v31 = vld [vmem:[%s2782_s0 + $0xc8] sm:$0xff]  ;;  %s2002_s11 = smov [#allocation5]  }
  0x25   :  { %v60_v32 = vld [vmem:[%s2782_s0 + $0xc0] sm:$0xff]  ;;  %v62_v33 = vld [vmem:[%s2782_s0 + $0xd0] sm:$0x3]  ;;  %v2150_v35 = vand.u32 127, %v34_v34  ;;  %s1999_s0 = smov 96   ;;  %s1687_s12 = sshll.u32 %s2002_s11, 4  ;;  %s1688_s12 = int_to_ptr.vmem [resolvable:$true] %s1687_s12 }
  0x26   :  { %121 = vperm.xlu1 %1927, %v55_v25   ;;  %118 = vperm.xlu0 %1926, %v54_v26   ;;  %p1980_p1 = scmp.lt.s32.totalorder %s1688_s12, %s1688_s12 }
  0x2a   :  { %127 = vperm.xlu1 %1927, %v57_v27   ;;  %124 = vperm.xlu0 %1926, %v56_v28  }
  0x2e   :  { %133 = vperm.xlu1 %1927, %v59_v29   ;;  %130 = vperm.xlu0 %1926, %v58_v30  }
  0x32   :  { %139 = vperm.xlu1 %1927, %v61_v31   ;;  %136 = vperm.xlu0 %1926, %v60_v32  }
  0x36   :  { %142 = vperm.xlu0 %1926, %v62_v33  }
  0x7d   :  { %v71_v36 = vpop.permute.xlu1 %70  ;;  %v65_v37 = vpop.permute.xlu0 %64 }
  0x7e   :  { %vm146_vm1 = vcmp.eq.s32.totalorder %v2150_v35, %v71_v36  ;;  %vm144_vm2 = vcmp.eq.s32.totalorder %v2150_v35, %v65_v37 }
  0x7f   :  { %v1697_v40 = vsel %vm146_vm1, 1.0, %v1998_v22  ;;  %v1695_v41 = vsel %vm144_vm2, 1.0, %v1998_v22 }
  0x81   :  { %v74_v38 = vpop.permute.xlu1 %73  ;;  %v68_v39 = vpop.permute.xlu0 %67 }
  0x82   :  { %vm147_vm3 = vcmp.eq.s32.totalorder %v2150_v35, %v74_v38  ;;  %vm145_vm4 = vcmp.eq.s32.totalorder %v2150_v35, %v68_v39 }
  0x83   :  { %v1698_v42 = vsel %vm147_vm3, 1.0, %v1998_v22  ;;  %v1696_v43 = vsel %vm145_vm4, 1.0, %v1998_v22 }
  0x84   :  { %v226_v44 = vpack.c.bf16 %v1698_v42, %v1697_v40  ;;  %v225_v45 = vpack.c.bf16 %v1696_v43, %v1695_v41 }
  0x85   :  { %v80_v46 = vpop.permute.xlu1 %79  ;;  %v77_v47 = vpop.permute.xlu0 %76 }
  0x86   :  { %vm149_vm6 = vcmp.eq.s32.totalorder %v2150_v35, %v80_v46  ;;  %vm148_vm7 = vcmp.eq.s32.totalorder %v2150_v35, %v77_v47  ;;  %1851 = vmatprep.mubr.msk.bf16.mxu0 %vm267_vm5, %v225_v45 }
  0x87   :  { %v1700_v48 = vsel %vm149_vm6, 1.0, %v1998_v22  ;;  %v1699_v49 = vsel %vm148_vm7, 1.0, %v1998_v22  ;;  %1852 = vmatmul.mubr.msk.bf16.vlgmr.msra.gmra.mxu0 %vm267_vm5, %v226_v44 }
  0x88   :  { %v227_v50 = vpack.c.bf16 %v1700_v48, %v1699_v49 }
  0x89   :  { %v86_v51 = vpop.permute.xlu1 %85  ;;  %v83_v52 = vpop.permute.xlu0 %82 }
  0x8a   :  { %vm151_vm8 = vcmp.eq.s32.totalorder %v2150_v35, %v86_v51  ;;  %vm150_vm9 = vcmp.eq.s32.totalorder %v2150_v35, %v83_v52  ;;  %1855 = vmatprep.mubr.msk.bf16.mxu0 %vm267_vm5, %v227_v50 }
  0x8b   :  { %v1702_v53 = vsel %vm151_vm8, 1.0, %v1998_v22  ;;  %v1701_v54 = vsel %vm150_vm9, 1.0, %v1998_v22 }
  0x8c   :  { %v228_v55 = vpack.c.bf16 %v1702_v53, %v1701_v54 }
  0x8d   :  { %v92_v56 = vpop.permute.xlu1 %91  ;;  %v89_v57 = vpop.permute.xlu0 %88 }
  0x8e   :  { %vm153_vm10 = vcmp.eq.s32.totalorder %v2150_v35, %v92_v56  ;;  %vm152_vm11 = vcmp.eq.s32.totalorder %v2150_v35, %v89_v57 }
  0x8f   :  { %v1704_v58 = vsel %vm153_vm10, 1.0, %v1998_v22  ;;  %v1703_v59 = vsel %vm152_vm11, 1.0, %v1998_v22  ;;  %1856 = vmatmul.mubr.msk.bf16.gmra.mxu0 %vm267_vm5, %v228_v55 }
  0x90   :  { %v229_v60 = vpack.c.bf16 %v1704_v58, %v1703_v59 }
  0x91   :  { %v98_v61 = vpop.permute.xlu1 %97  ;;  %v95_v62 = vpop.permute.xlu0 %94 }
  0x92   :  { %vm155_vm12 = vcmp.eq.s32.totalorder %v2150_v35, %v98_v61  ;;  %vm154_vm13 = vcmp.eq.s32.totalorder %v2150_v35, %v95_v62  ;;  %1859 = vmatprep.mubr.msk.bf16.mxu0 %vm267_vm5, %v229_v60 }
  0x93   :  { %v1706_v63 = vsel %vm155_vm12, 1.0, %v1998_v22  ;;  %v1705_v0 = vsel %vm154_vm13, 1.0, %v1998_v22 }
  0x94   :  { %v230_v1 = vpack.c.bf16 %v1706_v63, %v1705_v0 }
  0x95   :  { %v104_v3 = vpop.permute.xlu1 %103  ;;  %v101_v4 = vpop.permute.xlu0 %100 }
  0x96   :  { %vm157_vm14 = vcmp.eq.s32.totalorder %v2150_v35, %v104_v3  ;;  %vm156_vm15 = vcmp.eq.s32.totalorder %v2150_v35, %v101_v4 }
  0x97   :  { %v1708_v5 = vsel %vm157_vm14, 1.0, %v1998_v22  ;;  %v1707_v6 = vsel %vm156_vm15, 1.0, %v1998_v22  ;;  %1860 = vmatmul.mubr.msk.bf16.gmra.mxu0 %vm267_vm5, %v230_v1  ;;  %vm485_vm14 = vcmask 1046528   ;;  %vm887_vm15 = vcmask 254976  }
  0x98   :  { %v231_v7 = vpack.c.bf16 %v1708_v5, %v1707_v6  ;;  %888 = vst.msk [vmem:[#allocation2 + $0xd0] sm:$0x3] %vm887_vm15, %v1998_v22 }
  0x99   :  { %v110_v8 = vpop.permute.xlu1 %109  ;;  %v107_v9 = vpop.permute.xlu0 %106 }
  0x9a   :  { %vm159_vm0 = vcmp.eq.s32.totalorder %v2150_v35, %v110_v8  ;;  %vm158_vm1 = vcmp.eq.s32.totalorder %v2150_v35, %v107_v9  ;;  %1863 = vmatprep.mubr.msk.bf16.mxu0 %vm267_vm5, %v231_v7 }
  0x9b   :  { %v1710_v10 = vsel %vm159_vm0, 1.0, %v1998_v22  ;;  %v1709_v11 = vsel %vm158_vm1, 1.0, %v1998_v22  ;;  %vm860_vm0 = vcmask 261120   ;;  %vm1227_vm1 = vcmask 517120  }
  0x9c   :  { %v232_v12 = vpack.c.bf16 %v1710_v10, %v1709_v11  ;;  %1228 = vst.msk [vmem:[#allocation3 + $0x44] sm:$0x3] %vm1227_vm1, %v1998_v22 }
  0x9d   :  { %v116_v13 = vpop.permute.xlu1 %115  ;;  %v113_v14 = vpop.permute.xlu0 %112 }
  0x9e   :  { %vm161_vm2 = vcmp.eq.s32.totalorder %v2150_v35, %v116_v13  ;;  %vm160_vm3 = vcmp.eq.s32.totalorder %v2150_v35, %v113_v14 }
  0x9f   :  { %v1712_v15 = vsel %vm161_vm2, 1.0, %v1998_v22  ;;  %v1711_v16 = vsel %vm160_vm3, 1.0, %v1998_v22  ;;  %1864 = vmatmul.mubr.msk.bf16.gmra.mxu0 %vm267_vm5, %v232_v12  ;;  %vm1216_vm2 = vcmask 523264   ;;  %vm1225_vm3 = vcmask 519168  }
  0xa0   :  { %v233_v17 = vpack.c.bf16 %v1712_v15, %v1711_v16 }
  0xa1   :  { %v122_v18 = vpop.permute.xlu1 %121  ;;  %v119_v19 = vpop.permute.xlu0 %118 }
  0xa2   :  { %vm163_vm4 = vcmp.eq.s32.totalorder %v2150_v35, %v122_v18  ;;  %vm162_vm6 = vcmp.eq.s32.totalorder %v2150_v35, %v119_v19  ;;  %1867 = vmatprep.mubr.msk.bf16.mxu0 %vm267_vm5, %v233_v17 }
  0xa3   :  { %v1714_v20 = vsel %vm163_vm4, 1.0, %v1998_v22  ;;  %v1713_v21 = vsel %vm162_vm6, 1.0, %v1998_v22  ;;  %vm1257_vm4 = vcmask 521216   ;;  %vm2001_vm6 = vmmov 0  }
  0xa4   :  { %v234_v23 = vpack.c.bf16 %v1714_v20, %v1713_v21 }
  0xa5   :  { %v128_v24 = vpop.permute.xlu1 %127  ;;  %v125_v25 = vpop.permute.xlu0 %124 }
  0xa6   :  { %vm165_vm7 = vcmp.eq.s32.totalorder %v2150_v35, %v128_v24  ;;  %vm164_vm8 = vcmp.eq.s32.totalorder %v2150_v35, %v125_v25 }
  0xa7   :  { %v1716_v26 = vsel %vm165_vm7, 1.0, %v1998_v22  ;;  %v1715_v27 = vsel %vm164_vm8, 1.0, %v1998_v22  ;;  %1868 = vmatmul.mubr.msk.bf16.gmra.mxu0 %vm267_vm5, %v234_v23 }
  0xa8   :  { %v235_v28 = vpack.c.bf16 %v1716_v26, %v1715_v27 }
  0xa9   :  { %v134_v29 = vpop.permute.xlu1 %133  ;;  %v131_v30 = vpop.permute.xlu0 %130 }
  0xaa   :  { %vm167_vm9 = vcmp.eq.s32.totalorder %v2150_v35, %v134_v29  ;;  %vm166_vm10 = vcmp.eq.s32.totalorder %v2150_v35, %v131_v30  ;;  %1871 = vmatprep.mubr.msk.bf16.mxu0 %vm267_vm5, %v235_v28  ;;  %v1937_v30 = vld [vmem:[%s2785_s3 + $0x14] ss:$8 sps:$4 sm:$0xff]  }
  0xab   :  { %v1718_v31 = vsel %vm167_vm9, 1.0, %v1998_v22  ;;  %v1717_v32 = vsel %vm166_vm10, 1.0, %v1998_v22  ;;  %1016 = vmatprep.subr.bf16.mxu1 %v1937_v30 }
  0xac   :  { %v236_v33 = vpack.c.bf16 %v1718_v31, %v1717_v32 }
  0xad   :  { %v140_v34 = vpop.permute.xlu1 %139  ;;  %v137_v36 = vpop.permute.xlu0 %136 }
  0xae   :  { %vm169_vm11 = vcmp.eq.s32.totalorder %v2150_v35, %v140_v34  ;;  %vm168_vm12 = vcmp.eq.s32.totalorder %v2150_v35, %v137_v36 }
  0xaf   :  { %v1720_v37 = vsel %vm169_vm11, 1.0, %v1998_v22  ;;  %v1719_v38 = vsel %vm168_vm12, 1.0, %v1998_v22  ;;  %1872 = vmatmul.mubr.msk.bf16.gmra.mxu0 %vm267_vm5, %v236_v33  ;;  %v1939_v33 = vld [vmem:[%s2785_s3 + $0x10] ss:$8 sps:$4 sm:$0xff]  }
  0xb0   :  { %v237_v39 = vpack.c.bf16 %v1720_v37, %v1719_v38  ;;  %1017 = vmatpush1.bf16.msra.mxu1 %v1939_v33 }
  0xb1   :  { %v143_v40 = vpop.permute.xlu0 %142 }
  0xb2   :  { %vm170_vm13 = vcmp.eq.s32.totalorder %v2150_v35, %v143_v40  ;;  %1875 = vmatprep.mubr.msk.bf16.mxu0 %vm267_vm5, %v237_v39  ;;  %v1940_v40 = vld [vmem:[%s2785_s3 + $0x4] ss:$8 sps:$4 sm:$0xff]  }
  0xb3   :  { %v1721_v41 = vsel %vm170_vm13, 1.0, %v1998_v22  ;;  %1018 = vmatprep.subr.bf16.mxu1 %v1940_v40 }
  0xb4   :  { %v238_v42 = vpack.c.bf16 %v1721_v41, %v1721_v41 }
  0xb7   :  { %1876 = vmatmul.mubr.msk.bf16.gmra.mxu0 %vm267_vm5, %v238_v42  ;;  %vm643_vm5 = vcmask 1045504  }
  0xb8   :  { %1895 = vmatprep.mubr.msk.bf16.mxu0 %vm2001_vm6, %v1998_v22 }
 0x147   :  { %v2220_v43 = vpop.f32.mrf.mxu0 }
 0x148   :  { %v489_v46 = vrot.slane %v2220_v43, 1  ;;  %v647_v52 = vrot.slane %v2220_v43, 2 }
 0x149   :  { %v2222_v44 = vpop.f32.mrf.mxu0 }
 0x14a   :  { %v486_v58 = vrot.slane %v2222_v44, 1  ;;  %v644_v0 = vrot.slane %v2222_v44, 2 }
 0x14b   :  { %v2224_v45 = vpop.f32.mrf.mxu0 }
 0x14c   :  { %v491_v47 = vrot.slane %v2224_v45, 1  ;;  %v649_v35 = vrot.slane %v2224_v45, 2 }
 0x14d   :  { %v2228_v48 = vpop.f32.mrf.mxu0 }
 0x14e   :  { %v487_v49 = vrot.slane %v2228_v48, 1  ;;  %v492_v50 = vsel %vm485_vm14, %v489_v46, %v491_v47  ;;  %v645_v53 = vrot.slane %v2228_v48, 2  ;;  %v650_v56 = vsel %vm643_vm5, %v647_v52, %v649_v35 }
 0x14f   :  { %543 = vrot.lane.b32.xlu1 %v492_v50, %s1999_s0  ;;  %v2234_v51 = vpop.f32.mrf.mxu0 }
 0x150   :  { %v490_v54 = vsel %vm485_vm14, %v487_v49, %v489_v46  ;;  %v648_v60 = vsel %vm643_vm5, %v645_v53, %v647_v52  ;;  %v488_v62 = vsel %vm485_vm14, %v486_v58, %v487_v49  ;;  %v646_v6 = vsel %vm643_vm5, %v644_v0, %v645_v53  ;;  %v1942_v46 = vld [vmem:[%s2785_s3] ss:$8 sps:$4 sm:$0xff]  }
 0x151   :  { %541 = vrot.lane.b32.xlu0 %v490_v54, %s1999_s0  ;;  %v2240_v55 = vpop.f32.mrf.mxu0  ;;  %v497_v8 = vrot.slane %v2234_v51, 1  ;;  %v655_v15 = vrot.slane %v2234_v51, 2  ;;  %1019 = vmatpush1.bf16.msra.mxu1 %v1942_v46 }
 0x152   :  { %v493_v59 = vrot.slane %v2240_v55, 1  ;;  %v651_v1 = vrot.slane %v2240_v55, 2 }
 0x153   :  { %701 = vrot.lane.b32.xlu1 %v650_v56, %s2000_s27  ;;  %v2244_v57 = vpop.f32.mrf.mxu0 }
 0x154   :  { %v494_v3 = vsel %vm485_vm14, %v491_v47, %v493_v59  ;;  %v499_v5 = vrot.slane %v2244_v57, 1  ;;  %v652_v10 = vsel %vm643_vm5, %v649_v35, %v651_v1  ;;  %v657_v12 = vrot.slane %v2244_v57, 2 }
 0x155   :  { %699 = vrot.lane.b32.xlu0 %v648_v60, %s2000_s27  ;;  %v2250_v61 = vpop.f32.mrf.mxu0 }
 0x156   :  { %v495_v9 = vrot.slane %v2250_v61, 1  ;;  %v500_v13 = vsel %vm485_vm14, %v497_v8, %v499_v5  ;;  %v653_v16 = vrot.slane %v2250_v61, 2  ;;  %v658_v19 = vsel %vm643_vm5, %v655_v15, %v657_v12 }
 0x157   :  { %539 = vrot.lane.b32.xlu1 %v488_v62, %s1999_s0  ;;  %v2254_v63 = vpop.f32.mrf.mxu0 }
 0x158   :  { %v498_v17 = vsel %vm485_vm14, %v495_v9, %v497_v8  ;;  %v656_v23 = vsel %vm643_vm5, %v653_v16, %v655_v15  ;;  %v496_v25 = vsel %vm485_vm14, %v493_v59, %v495_v9  ;;  %v654_v32 = vsel %vm643_vm5, %v651_v1, %v653_v16 }
 0x159   :  { %545 = vrot.lane.b32.xlu0 %v494_v3, %s1999_s0  ;;  %v2260_v4 = vpop.f32.mrf.mxu0  ;;  %v505_v36 = vrot.slane %v2254_v63, 1  ;;  %v663_v35 = vrot.slane %v2254_v63, 2 }
 0x15a   :  { %v501_v21 = vrot.slane %v2260_v4, 1  ;;  %v659_v27 = vrot.slane %v2260_v4, 2 }
 0x15b   :  { %697 = vrot.lane.b32.xlu1 %v646_v6, %s2000_s27  ;;  %v2265_v7 = vpop.f32.mrf.mxu0 }
 0x15c   :  { %v502_v28 = vsel %vm485_vm14, %v499_v5, %v501_v21  ;;  %v507_v31 = vrot.slane %v2265_v7, 1  ;;  %v660_v38 = vsel %vm643_vm5, %v657_v12, %v659_v27  ;;  %v665_v41 = vrot.slane %v2265_v7, 2 }
 0x15d   :  { %703 = vrot.lane.b32.xlu0 %v652_v10, %s2000_s27  ;;  %v2271_v11 = vpop.f32.mrf.mxu0 }
 0x15e   :  { %v503_v37 = vrot.slane %v2271_v11, 1  ;;  %v508_v42 = vsel %vm485_vm14, %v505_v36, %v507_v31  ;;  %v661_v49 = vrot.slane %v2271_v11, 2  ;;  %v666_v53 = vsel %vm643_vm5, %v663_v35, %v665_v41 }
 0x15f   :  { %551 = vrot.lane.b32.xlu1 %v500_v13, %s1999_s0  ;;  %v2276_v14 = vpop.f32.mrf.mxu0 }
 0x160   :  { %v506_v50 = vsel %vm485_vm14, %v503_v37, %v505_v36  ;;  %v664_v58 = vsel %vm643_vm5, %v661_v49, %v663_v35  ;;  %v504_v60 = vsel %vm485_vm14, %v501_v21, %v503_v37  ;;  %v662_v6 = vsel %vm643_vm5, %v659_v27, %v661_v49 }
 0x161   :  { %549 = vrot.lane.b32.xlu0 %v498_v17, %s1999_s0  ;;  %v2282_v18 = vpop.f32.mrf.mxu0  ;;  %v513_v9 = vrot.slane %v2276_v14, 1  ;;  %v671_v16 = vrot.slane %v2276_v14, 2 }
 0x162   :  { %v509_v56 = vrot.slane %v2282_v18, 1  ;;  %v667_v0 = vrot.slane %v2282_v18, 2 }
 0x163   :  { %709 = vrot.lane.b32.xlu1 %v658_v19, %s2000_s27  ;;  %v2286_v20 = vpop.f32.mrf.mxu0 }
 0x164   :  { %v510_v1 = vsel %vm485_vm14, %v507_v31, %v509_v56  ;;  %v515_v5 = vrot.slane %v2286_v20, 1  ;;  %v668_v12 = vsel %vm643_vm5, %v665_v41, %v667_v0  ;;  %v673_v13 = vrot.slane %v2286_v20, 2 }
 0x165   :  { %707 = vrot.lane.b32.xlu0 %v656_v23, %s2000_s27  ;;  %v2291_v24 = vpop.f32.mrf.mxu0 }
 0x166   :  { %v511_v10 = vrot.slane %v2291_v24, 1  ;;  %v516_v15 = vsel %vm485_vm14, %v513_v9, %v515_v5  ;;  %v669_v17 = vrot.slane %v2291_v24, 2  ;;  %v674_v21 = vsel %vm643_vm5, %v671_v16, %v673_v13 }
 0x167   :  { %547 = vrot.lane.b32.xlu1 %v496_v25, %s1999_s0  ;;  %v2295_v26 = vpop.f32.mrf.mxu0 }
 0x168   :  { %v514_v19 = vsel %vm485_vm14, %v511_v10, %v513_v9  ;;  %v672_v25 = vsel %vm643_vm5, %v669_v17, %v671_v16  ;;  %v512_v27 = vsel %vm485_vm14, %v509_v56, %v511_v10  ;;  %v521_v33 = vrot.slane %v2295_v26, 1 }
 0x169   :  { %553 = vrot.lane.b32.xlu0 %v502_v28, %s1999_s0  ;;  %v2300_v29 = vpop.f32.mrf.mxu0  ;;  %v679_v41 = vrot.slane %v2295_v26, 2 }
 0x16a   :  { %v517_v23 = vrot.slane %v2300_v29, 1  ;;  %v675_v28 = vrot.slane %v2300_v29, 2 }
 0x16b   :  { %705 = vrot.lane.b32.xlu1 %v654_v32, %s2000_s27  ;;  %v2311_v34 = vpop.f32.mrf.mxu0  ;;  %v670_v32 = vsel %vm643_vm5, %v667_v0, %v669_v17 }
 0x16c   :  { %v518_v30 = vsel %vm485_vm14, %v515_v5, %v517_v23  ;;  %v523_v31 = vrot.slane %v2311_v34, 1  ;;  %v676_v37 = vsel %vm643_vm5, %v673_v13, %v675_v28 }
 0x16d   :  { %711 = vrot.lane.b32.xlu0 %v660_v38, %s2000_s27  ;;  %v2317_v39 = vpop.f32.mrf.mxu0  ;;  %v681_v38 = vrot.slane %v2311_v34, 2 }
 0x16e   :  { %v519_v36 = vrot.slane %v2317_v39, 1  ;;  %v524_v40 = vsel %vm485_vm14, %v521_v33, %v523_v31 }
 0x16f   :  { %559 = vrot.lane.b32.xlu1 %v508_v42, %s1999_s0  ;;  %v2328_v47 = vpop.f32.mrf.mxu0  ;;  %v677_v42 = vrot.slane %v2317_v39, 2  ;;  %v682_v35 = vsel %vm643_vm5, %v679_v41, %v681_v38 }
 0x170   :  { %v522_v46 = vsel %vm485_vm14, %v519_v36, %v521_v33  ;;  %v687_v10 = vrot.slane %v2328_v47, 2 }
 0x171   :  { %557 = vrot.lane.b32.xlu0 %v506_v50, %s1999_s0  ;;  %v2334_v52 = vpop.f32.mrf.mxu0  ;;  %v680_v50 = vsel %vm643_vm5, %v677_v42, %v679_v41  ;;  %v678_v0 = vsel %vm643_vm5, %v675_v28, %v677_v42 }
 0x172   :  { %v525_v49 = vrot.slane %v2334_v52, 1  ;;  %v683_v56 = vrot.slane %v2334_v52, 2 }
 0x173   :  { %717 = vrot.lane.b32.xlu1 %v666_v53, %s2000_s27  ;;  %v2338_v54 = vpop.f32.mrf.mxu0  ;;  %v520_v53 = vsel %vm485_vm14, %v517_v23, %v519_v36 }
 0x175   :  { %715 = vrot.lane.b32.xlu0 %v664_v58, %s2000_s27  ;;  %v2343_v59 = vpop.f32.mrf.mxu0  ;;  %v526_v58 = vsel %vm485_vm14, %v523_v31, %v525_v49 }
 0x176   :  { %v527_v5 = vrot.slane %v2343_v59, 1 }
 0x177   :  { %555 = vrot.lane.b32.xlu1 %v504_v60, %s1999_s0  ;;  %v2347_v62 = vpop.f32.mrf.mxu0  ;;  %v531_v60 = vrot.slane %v2338_v54, 1 }
 0x178   :  { %v537_v31 = vrot.slane %v2347_v62, 1 }
 0x179   :  { %561 = vrot.lane.b32.xlu0 %v510_v1, %s1999_s0  ;;  %v2352_v3 = vpop.f32.mrf.mxu0  ;;  %v529_v1 = vrot.slane %v2328_v47, 1 }
 0x17a   :  { %v533_v16 = vrot.slane %v2352_v3, 1  ;;  %v691_v23 = vrot.slane %v2352_v3, 2 }
 0x17b   :  { %713 = vrot.lane.b32.xlu1 %v662_v6, %s2000_s27  ;;  %v1878_v8 = vpop.f32.mrf.mxu0  ;;  %v684_v6 = vsel %vm643_vm5, %v681_v38, %v683_v56  ;;  %v532_v9 = vsel %vm485_vm14, %v529_v1, %v531_v60  ;;  %v530_v13 = vsel %vm485_vm14, %v527_v5, %v529_v1 }
 0x17c   :  { %v689_v8 = vrot.slane %v2338_v54, 2 }
 0x17d   :  { %719 = vrot.lane.b32.xlu0 %v668_v12, %s2000_s27  ;;  %v685_v12 = vrot.slane %v2343_v59, 2 }
 0x17f   :  { %567 = vrot.lane.b32.xlu1 %v516_v15, %s1999_s0  ;;  %v690_v15 = vsel %vm643_vm5, %v687_v10, %v689_v8  ;;  %v688_v17 = vsel %vm643_vm5, %v685_v12, %v687_v10  ;;  %v686_v28 = vsel %vm643_vm5, %v683_v56, %v685_v12 }
 0x181   :  { %565 = vrot.lane.b32.xlu0 %v514_v19, %s1999_s0  ;;  %v528_v19 = vsel %vm485_vm14, %v525_v49, %v527_v5 }
 0x183   :  { %725 = vrot.lane.b32.xlu1 %v674_v21, %s2000_s27  ;;  %v2422_v21 = vpop.f32.mrf.mxu0 }
 0x185   :  { %723 = vrot.lane.b32.xlu0 %v672_v25, %s2000_s27  ;;  %v534_v25 = vsel %vm485_vm14, %v531_v60, %v533_v16 }
 0x187   :  { %563 = vrot.lane.b32.xlu1 %v512_v27, %s1999_s0  ;;  %v535_v27 = vrot.slane %v2422_v21, 1 }
 0x189   :  { %569 = vrot.lane.b32.xlu0 %v518_v30, %s1999_s0  ;;  %v692_v30 = vsel %vm643_vm5, %v689_v8, %v691_v23  ;;  %v536_v33 = vsel %vm485_vm14, %v533_v16, %v535_v27  ;;  %v538_v36 = vsel %vm485_vm14, %v535_v27, %v537_v31 }
 0x18b   :  { %721 = vrot.lane.b32.xlu1 %v670_v32, %s2000_s27  ;;  %v693_v32 = vrot.slane %v2422_v21, 2 }
 0x18d   :  { %727 = vrot.lane.b32.xlu0 %v676_v37, %s2000_s27  ;;  %v695_v37 = vrot.slane %v2347_v62, 2  ;;  %v694_v38 = vsel %vm643_vm5, %v691_v23, %v693_v32 }
 0x18f   :  { %575 = vrot.lane.b32.xlu1 %v524_v40, %s1999_s0  ;;  %v696_v40 = vsel %vm643_vm5, %v693_v32, %v695_v37 }
 0x191   :  { %573 = vrot.lane.b32.xlu0 %v522_v46, %s1999_s0 }
 0x193   :  { %733 = vrot.lane.b32.xlu1 %v682_v35, %s2000_s27  ;;  %v2449_v35 = vld [vmem:[%s2784_s2] ss:$0 sm:$0xff] }
 0x195   :  { %731 = vrot.lane.b32.xlu0 %v680_v50, %s2000_s27 }
 0x197   :  { %571 = vrot.lane.b32.xlu1 %v520_v53, %s1999_s0 }
 0x199   :  { %577 = vrot.lane.b32.xlu0 %v526_v58, %s1999_s0 }
 0x19b   :  { %729 = vrot.lane.b32.xlu1 %v678_v0, %s2000_s27 }
 0x19d   :  { %735 = vrot.lane.b32.xlu0 %v684_v6, %s2000_s27 }
 0x19f   :  { %583 = vrot.lane.b32.xlu1 %v532_v9, %s1999_s0 }
 0x1a1   :  { %581 = vrot.lane.b32.xlu0 %v530_v13, %s1999_s0 }
 0x1a3   :  { %741 = vrot.lane.b32.xlu1 %v690_v15, %s2000_s27 }
 0x1a5   :  { %739 = vrot.lane.b32.xlu0 %v688_v17, %s2000_s27 }
 0x1a7   :  { %579 = vrot.lane.b32.xlu1 %v528_v19, %s1999_s0 }
 0x1a9   :  { %585 = vrot.lane.b32.xlu0 %v534_v25, %s1999_s0 }
 0x1ab   :  { %737 = vrot.lane.b32.xlu1 %v686_v28, %s2000_s27 }
 0x1ad   :  { %743 = vrot.lane.b32.xlu0 %v692_v30, %s2000_s27 }
 0x1af   :  { %587 = vrot.lane.b32.xlu1 %v536_v33, %s1999_s0 }
 0x1b1   :  { %589 = vrot.lane.b32.xlu0 %v538_v36, %s1999_s0 }
 0x1b3   :  { %745 = vrot.lane.b32.xlu1 %v694_v38, %s2000_s27 }
 0x1b5   :  { %747 = vrot.lane.b32.xlu0 %v696_v40, %s2000_s27 }
 0x1c1   :  { %v544_v41 = vpop.permute.xlu1 %543 }
 0x1c2   :  { %v619_v46 = vadd.f32 %v2220_v43, %v544_v41 }
 0x1c3   :  { %v542_v42 = vpop.permute.xlu0 %541 }
 0x1c4   :  { %v618_v62 = vadd.f32 %v542_v42, %v2228_v48 }
 0x1c5   :  { %v702_v49 = vpop.permute.xlu1 %701 }
 0x1c6   :  { %v777_v50 = vadd.f32 %v702_v49, %v619_v46 }
 0x1c7   :  { %v700_v53 = vpop.permute.xlu0 %699 }
 0x1c8   :  { %v810_v56 = vadd.f32 %v2449_v35, %v777_v50  ;;  %v776_v58 = vadd.f32 %v700_v53, %v618_v62 }
 0x1c9   :  { %v540_v60 = vpop.permute.xlu1 %539 }
 0x1ca   :  { %v836_v0 = vmax.f32 %v810_v56, 0.0  ;;  %v809_v1 = vadd.f32 %v2449_v35, %v776_v58  ;;  %v617_v6 = vadd.f32 %v540_v60, %v2222_v44 }
 0x1cb   :  { %v546_v5 = vpop.permute.xlu0 %545 }
 0x1cc   :  { %863 = vst.msk [vmem:[#allocation2 + $0x10] sm:$0xff] %vm860_vm0, %v836_v0  ;;  %v835_v43 = vmax.f32 %v809_v1, 0.0  ;;  %v620_v48 = vadd.f32 %v2224_v45, %v546_v5 }
 0x1cd   :  { %v698_v8 = vpop.permute.xlu1 %697 }
 0x1ce   :  { %862 = vst.msk [vmem:[#allocation2 + $0x8] sm:$0xff] %vm860_vm0, %v835_v43  ;;  %v775_v9 = vadd.f32 %v698_v8, %v617_v6 }
 0x1cf   :  { %v704_v10 = vpop.permute.xlu0 %703 }
 0x1d0   :  { %v808_v12 = vadd.f32 %v2449_v35, %v775_v9  ;;  %v778_v13 = vadd.f32 %v704_v10, %v620_v48 }
 0x1d1   :  { %v552_v15 = vpop.permute.xlu1 %551 }
 0x1d2   :  { %v834_v16 = vmax.f32 %v808_v12, 0.0  ;;  %v811_v17 = vadd.f32 %v2449_v35, %v778_v13  ;;  %v623_v44 = vadd.f32 %v2234_v51, %v552_v15 }
 0x1d3   :  { %v550_v19 = vpop.permute.xlu0 %549 }
 0x1d4   :  { %861 = vst.msk [vmem:[#allocation2] sm:$0xff] %vm860_vm0, %v834_v16  ;;  %v837_v23 = vmax.f32 %v811_v17, 0.0  ;;  %v622_v45 = vadd.f32 %v550_v19, %v2250_v61 }
 0x1d5   :  { %v710_v25 = vpop.permute.xlu1 %709 }
 0x1d6   :  { %864 = vst.msk [vmem:[#allocation2 + $0x18] sm:$0xff] %vm860_vm0, %v837_v23  ;;  %v781_v27 = vadd.f32 %v710_v25, %v623_v44 }
 0x1d7   :  { %v708_v28 = vpop.permute.xlu0 %707 }
 0x1d8   :  { %v814_v30 = vadd.f32 %v2449_v35, %v781_v27  ;;  %v780_v31 = vadd.f32 %v708_v28, %v622_v45 }
 0x1d9   :  { %v548_v32 = vpop.permute.xlu1 %547 }
 0x1da   :  { %v840_v33 = vmax.f32 %v814_v30, 0.0  ;;  %v813_v36 = vadd.f32 %v2449_v35, %v780_v31  ;;  %v621_v51 = vadd.f32 %v548_v32, %v2240_v55 }
 0x1db   :  { %v554_v37 = vpop.permute.xlu0 %553  ;;  %v889_v5 = vld [vmem:[#allocation2] ss:$3 sm:$0xff]  ;;  %v907_v43 = vld [vmem:[#allocation2 + $0x1] ss:$3 sm:$0xff]  ;;  %v934_v23 = vld [vmem:[#allocation2 + $0x2] ss:$3 sm:$0xff] }
 0x1dc   :  { %867 = vst.msk [vmem:[#allocation2 + $0x30] sm:$0xff] %vm860_vm0, %v840_v33  ;;  %v839_v38 = vmax.f32 %v813_v36, 0.0  ;;  %v624_v61 = vadd.f32 %v2244_v57, %v554_v37  ;;  %v924_v12 = vmax.f32 %v889_v5, %v907_v43 }
 0x1dd   :  { %v706_v40 = vpop.permute.xlu1 %705 }
 0x1de   :  { %866 = vst.msk [vmem:[#allocation2 + $0x28] sm:$0xff] %vm860_vm0, %v839_v38  ;;  %v779_v41 = vadd.f32 %v706_v40, %v621_v51  ;;  %v951_v27 = vmax.f32 %v924_v12, %v934_v23 }
 0x1df   :  { %v712_v42 = vpop.permute.xlu0 %711 }
 0x1e0   :  { %v812_v46 = vadd.f32 %v2449_v35, %v779_v41  ;;  %v782_v49 = vadd.f32 %v712_v42, %v624_v61 }
 0x1e1   :  { %v560_v62 = vpop.permute.xlu1 %559 }
 0x1e2   :  { %v838_v50 = vmax.f32 %v812_v46, 0.0  ;;  %v815_v53 = vadd.f32 %v2449_v35, %v782_v49  ;;  %v627_v55 = vadd.f32 %v2254_v63, %v560_v62 }
 0x1e3   :  { %v558_v56 = vpop.permute.xlu0 %557 }
 0x1e4   :  { %865 = vst.msk [vmem:[#allocation2 + $0x20] sm:$0xff] %vm860_vm0, %v838_v50  ;;  %v841_v58 = vmax.f32 %v815_v53, 0.0  ;;  %v626_v57 = vadd.f32 %v558_v56, %v2271_v11 }
 0x1e5   :  { %v718_v60 = vpop.permute.xlu1 %717 }
 0x1e6   :  { %868 = vst.msk [vmem:[#allocation2 + $0x38] sm:$0xff] %vm860_vm0, %v841_v58  ;;  %v785_v0 = vadd.f32 %v718_v60, %v627_v55 }
 0x1e7   :  { %v716_v1 = vpop.permute.xlu0 %715 }
 0x1e8   :  { %v818_v6 = vadd.f32 %v2449_v35, %v785_v0  ;;  %v784_v8 = vadd.f32 %v716_v1, %v626_v57 }
 0x1e9   :  { %v556_v48 = vpop.permute.xlu1 %555 }
 0x1ea   :  { %v844_v9 = vmax.f32 %v818_v6, 0.0  ;;  %v817_v10 = vadd.f32 %v2449_v35, %v784_v8  ;;  %v625_v11 = vadd.f32 %v556_v48, %v2260_v4 }
 0x1eb   :  { %v562_v13 = vpop.permute.xlu0 %561  ;;  %v891_v15 = vld [vmem:[#allocation2 + $0x18] ss:$3 sm:$0xff]  ;;  %v909_v63 = vld [vmem:[#allocation2 + $0x19] ss:$3 sm:$0xff]  ;;  %v936_v44 = vld [vmem:[#allocation2 + $0x1a] ss:$3 sm:$0xff] }
 0x1ec   :  { %871 = vst.msk [vmem:[#allocation2 + $0x50] sm:$0xff] %vm860_vm0, %v844_v9  ;;  %v843_v16 = vmax.f32 %v817_v10, 0.0  ;;  %v925_v17 = vmax.f32 %v891_v15, %v909_v63  ;;  %v628_v25 = vadd.f32 %v2265_v7, %v562_v13 }
 0x1ed   :  { %v714_v19 = vpop.permute.xlu1 %713 }
 0x1ee   :  { %870 = vst.msk [vmem:[#allocation2 + $0x48] sm:$0xff] %vm860_vm0, %v843_v16  ;;  %v783_v45 = vadd.f32 %v714_v19, %v625_v11  ;;  %v952_v28 = vmax.f32 %v925_v17, %v936_v44 }
 0x1ef   :  { %v720_v30 = vpop.permute.xlu0 %719 }
 0x1f0   :  { %v816_v31 = vadd.f32 %v2449_v35, %v783_v45  ;;  %v786_v32 = vadd.f32 %v720_v30, %v628_v25  ;;  %v960_v33 = vpack.c.bf16 %v952_v28, %v951_v27 }
 0x1f1   :  { %v568_v36 = vpop.permute.xlu1 %567 }
 0x1f2   :  { %v842_v37 = vmax.f32 %v816_v31, 0.0  ;;  %v819_v4 = vadd.f32 %v2449_v35, %v786_v32  ;;  %1745 = vmatmul.mubr.msk.bf16.vlgmr.msra.gmra.mxu1 %vm860_vm0, %v960_v33  ;;  %v631_v51 = vadd.f32 %v2276_v14, %v568_v36 }
 0x1f3   :  { %v566_v38 = vpop.permute.xlu0 %565  ;;  %1046 = vmatprep.mubr.bf16.mxu1 %v1997_v2 }
 0x1f4   :  { %869 = vst.msk [vmem:[#allocation2 + $0x40] sm:$0xff] %vm860_vm0, %v842_v37  ;;  %v845_v7 = vmax.f32 %v819_v4, 0.0  ;;  %v630_v61 = vadd.f32 %v566_v38, %v2291_v24 }
 0x1f5   :  { %v726_v40 = vpop.permute.xlu1 %725 }
 0x1f6   :  { %872 = vst.msk [vmem:[#allocation2 + $0x58] sm:$0xff] %vm860_vm0, %v845_v7  ;;  %v789_v41 = vadd.f32 %v726_v40, %v631_v51 }
 0x1f7   :  { %v724_v42 = vpop.permute.xlu0 %723 }
 0x1f8   :  { %v822_v46 = vadd.f32 %v2449_v35, %v789_v41  ;;  %v788_v49 = vadd.f32 %v724_v42, %v630_v61 }
 0x1f9   :  { %v564_v62 = vpop.permute.xlu1 %563 }
 0x1fa   :  { %v848_v50 = vmax.f32 %v822_v46, 0.0  ;;  %v821_v53 = vadd.f32 %v2449_v35, %v788_v49  ;;  %v629_v60 = vadd.f32 %v564_v62, %v2282_v18 }
 0x1fb   :  { %v570_v56 = vpop.permute.xlu0 %569  ;;  %v893_v58 = vld [vmem:[#allocation2 + $0x30] ss:$3 sm:$0xff]  ;;  %v911_v55 = vld [vmem:[#allocation2 + $0x31] ss:$3 sm:$0xff]  ;;  %v938_v48 = vld [vmem:[#allocation2 + $0x32] ss:$3 sm:$0xff] }
 0x1fc   :  { %875 = vst.msk [vmem:[#allocation2 + $0x70] sm:$0xff] %vm860_vm0, %v848_v50  ;;  %v847_v14 = vmax.f32 %v821_v53, 0.0  ;;  %v926_v57 = vmax.f32 %v893_v58, %v911_v55  ;;  %v632_v5 = vadd.f32 %v2286_v20, %v570_v56 }
 0x1fd   :  { %v722_v0 = vpop.permute.xlu1 %721  ;;  %v895_v24 = vld [vmem:[#allocation2 + $0x48] ss:$3 sm:$0xff]  ;;  %v913_v1 = vld [vmem:[#allocation2 + $0x49] ss:$3 sm:$0xff]  ;;  %v940_v9 = vld [vmem:[#allocation2 + $0x4a] ss:$3 sm:$0xff] }
 0x1fe   :  { %874 = vst.msk [vmem:[#allocation2 + $0x68] sm:$0xff] %vm860_vm0, %v847_v14  ;;  %v787_v43 = vadd.f32 %v722_v0, %v629_v60  ;;  %v927_v6 = vmax.f32 %v895_v24, %v913_v1  ;;  %v953_v13 = vmax.f32 %v926_v57, %v938_v48 }
 0x1ff   :  { %v728_v8 = vpop.permute.xlu0 %727 }
 0x200   :  { %v820_v10 = vadd.f32 %v2449_v35, %v787_v43  ;;  %v790_v12 = vadd.f32 %v728_v8, %v632_v5  ;;  %v954_v15 = vmax.f32 %v927_v6, %v940_v9 }
 0x201   :  { %v576_v63 = vpop.permute.xlu1 %575 }
 0x202   :  { %v846_v18 = vmax.f32 %v820_v10, 0.0  ;;  %v823_v16 = vadd.f32 %v2449_v35, %v790_v12  ;;  %v961_v11 = vpack.c.bf16 %v954_v15, %v953_v13  ;;  %v635_v20 = vadd.f32 %v2295_v26, %v576_v63 }
 0x203   :  { %v574_v17 = vpop.permute.xlu0 %573 }
 0x204   :  { %873 = vst.msk [vmem:[#allocation2 + $0x60] sm:$0xff] %vm860_vm0, %v846_v18  ;;  %v849_v19 = vmax.f32 %v823_v16, 0.0  ;;  %1746 = vmatmul.mubr.msk.bf16.gmra.mxu1 %vm860_vm0, %v961_v11  ;;  %v634_v44 = vadd.f32 %v574_v17, %v2317_v39 }
 0x205   :  { %v734_v23 = vpop.permute.xlu1 %733  ;;  %1056 = vmatprep.mubr.bf16.mxu1 %v1997_v2 }
 0x206   :  { %876 = vst.msk [vmem:[#allocation2 + $0x78] sm:$0xff] %vm860_vm0, %v849_v19  ;;  %v793_v25 = vadd.f32 %v734_v23, %v635_v20 }
 0x207   :  { %v732_v45 = vpop.permute.xlu0 %731 }
 0x208   :  { %v826_v27 = vadd.f32 %v2449_v35, %v793_v25  ;;  %v792_v28 = vadd.f32 %v732_v45, %v634_v44 }
 0x209   :  { %v572_v30 = vpop.permute.xlu1 %571 }
 0x20a   :  { %v852_v31 = vmax.f32 %v826_v27, 0.0  ;;  %v825_v32 = vadd.f32 %v2449_v35, %v792_v28  ;;  %v633_v36 = vadd.f32 %v572_v30, %v2300_v29 }
 0x20b   :  { %v578_v33 = vpop.permute.xlu0 %577  ;;  %v897_v53 = vld [vmem:[#allocation2 + $0x60] ss:$3 sm:$0xff]  ;;  %v915_v56 = vld [vmem:[#allocation2 + $0x61] ss:$3 sm:$0xff]  ;;  %v942_v8 = vld [vmem:[#allocation2 + $0x62] ss:$3 sm:$0xff] }
 0x20c   :  { %879 = vst.msk [vmem:[#allocation2 + $0x90] sm:$0xff] %vm860_vm0, %v852_v31  ;;  %v851_v26 = vmax.f32 %v825_v32, 0.0  ;;  %v636_v39 = vadd.f32 %v2311_v34, %v578_v33  ;;  %v928_v0 = vmax.f32 %v897_v53, %v915_v56 }
 0x20d   :  { %v730_v37 = vpop.permute.xlu1 %729 }
 0x20e   :  { %878 = vst.msk [vmem:[#allocation2 + $0x88] sm:$0xff] %vm860_vm0, %v851_v26  ;;  %v791_v4 = vadd.f32 %v730_v37, %v633_v36  ;;  %v955_v12 = vmax.f32 %v928_v0, %v942_v8 }
 0x20f   :  { %v736_v38 = vpop.permute.xlu0 %735 }
 0x210   :  { %v824_v7 = vadd.f32 %v2449_v35, %v791_v4  ;;  %v794_v51 = vadd.f32 %v736_v38, %v636_v39 }
 0x211   :  { %v584_v40 = vpop.permute.xlu1 %583 }
 0x212   :  { %v850_v61 = vmax.f32 %v824_v7, 0.0  ;;  %v827_v41 = vadd.f32 %v2449_v35, %v794_v51  ;;  %v639_v29 = vadd.f32 %v2328_v47, %v584_v40 }
 0x213   :  { %v582_v42 = vpop.permute.xlu0 %581 }
 0x214   :  { %877 = vst.msk [vmem:[#allocation2 + $0x80] sm:$0xff] %vm860_vm0, %v850_v61  ;;  %v853_v46 = vmax.f32 %v827_v41, 0.0  ;;  %v638_v34 = vadd.f32 %v582_v42, %v2343_v59 }
 0x215   :  { %v742_v49 = vpop.permute.xlu1 %741 }
 0x216   :  { %880 = vst.msk [vmem:[#allocation2 + $0x98] sm:$0xff] %vm860_vm0, %v853_v46  ;;  %v797_v62 = vadd.f32 %v742_v49, %v639_v29 }
 0x217   :  { %v740_v50 = vpop.permute.xlu0 %739 }
 0x218   :  { %v830_v58 = vadd.f32 %v2449_v35, %v797_v62  ;;  %v796_v55 = vadd.f32 %v740_v50, %v638_v34 }
 0x219   :  { %v580_v14 = vpop.permute.xlu1 %579 }
 0x21a   :  { %v856_v60 = vmax.f32 %v830_v58, 0.0  ;;  %v829_v57 = vadd.f32 %v2449_v35, %v796_v55  ;;  %v637_v59 = vadd.f32 %v580_v14, %v2334_v52 }
 0x21b   :  { %v586_v24 = vpop.permute.xlu0 %585  ;;  %v899_v1 = vld [vmem:[#allocation2 + $0x78] ss:$3 sm:$0xff]  ;;  %v917_v47 = vld [vmem:[#allocation2 + $0x79] ss:$3 sm:$0xff]  ;;  %v944_v48 = vld [vmem:[#allocation2 + $0x7a] ss:$3 sm:$0xff] }
 0x21c   :  { %883 = vst.msk [vmem:[#allocation2 + $0xb0] sm:$0xff] %vm860_vm0, %v856_v60  ;;  %v855_v5 = vmax.f32 %v829_v57, 0.0  ;;  %v929_v43 = vmax.f32 %v899_v1, %v917_v47  ;;  %v640_v9 = vadd.f32 %v2338_v54, %v586_v24 }
 0x21d   :  { %v738_v6 = vpop.permute.xlu1 %737 }
 0x21e   :  { %882 = vst.msk [vmem:[#allocation2 + $0xa8] sm:$0xff] %vm860_vm0, %v855_v5  ;;  %v795_v10 = vadd.f32 %v738_v6, %v637_v59  ;;  %v956_v13 = vmax.f32 %v929_v43, %v944_v48 }
 0x21f   :  { %v744_v15 = vpop.permute.xlu0 %743 }
 0x220   :  { %v828_v63 = vadd.f32 %v2449_v35, %v795_v10  ;;  %v798_v18 = vadd.f32 %v744_v15, %v640_v9  ;;  %v962_v16 = vpack.c.bf16 %v956_v13, %v955_v12 }
 0x221   :  { %v588_v11 = vpop.permute.xlu1 %587 }
 0x222   :  { %v854_v17 = vmax.f32 %v828_v63, 0.0  ;;  %v831_v52 = vadd.f32 %v2449_v35, %v798_v18  ;;  %1747 = vmatmul.mubr.msk.bf16.gmra.mxu1 %vm860_vm0, %v962_v16  ;;  %v641_v20 = vadd.f32 %v588_v11, %v2352_v3 }
 0x223   :  { %v590_v19 = vpop.permute.xlu0 %589  ;;  %1066 = vmatprep.mubr.bf16.mxu1 %v1997_v2 }
 0x224   :  { %881 = vst.msk [vmem:[#allocation2 + $0xa0] sm:$0xff] %vm860_vm0, %v854_v17  ;;  %v857_v54 = vmax.f32 %v831_v52, 0.0  ;;  %v642_v44 = vadd.f32 %v590_v19, %v2422_v21 }
 0x225   :  { %v746_v23 = vpop.permute.xlu1 %745 }
 0x226   :  { %884 = vst.msk [vmem:[#allocation2 + $0xb8] sm:$0xff] %vm860_vm0, %v857_v54  ;;  %v799_v25 = vadd.f32 %v746_v23, %v641_v20 }
 0x227   :  { %v748_v45 = vpop.permute.xlu0 %747 }
 0x228   :  { %v832_v27 = vadd.f32 %v2449_v35, %v799_v25  ;;  %v800_v28 = vadd.f32 %v748_v45, %v642_v44 }
 0x22a   :  { %v858_v30 = vmax.f32 %v832_v27, 0.0  ;;  %v833_v31 = vadd.f32 %v2449_v35, %v800_v28 }
 0x22b   :  { %v901_v32 = vld [vmem:[#allocation2 + $0x90] ss:$3 sm:$0xff]  ;;  %v919_v33 = vld [vmem:[#allocation2 + $0x91] ss:$3 sm:$0xff]  ;;  %v946_v21 = vld [vmem:[#allocation2 + $0x92] ss:$3 sm:$0xff] }
 0x22c   :  { %885 = vst.msk [vmem:[#allocation2 + $0xc0] sm:$0xff] %vm860_vm0, %v858_v30  ;;  %v859_v26 = vmax.f32 %v833_v31, 0.0  ;;  %v930_v36 = vmax.f32 %v901_v32, %v919_v33 }
 0x22d   :  { %v903_v3 = vld [vmem:[#allocation2 + $0xa8] ss:$3 sm:$0xff]  ;;  %v921_v37 = vld [vmem:[#allocation2 + $0xa9] ss:$3 sm:$0xff]  ;;  %v948_v4 = vld [vmem:[#allocation2 + $0xaa] ss:$3 sm:$0xff] }
 0x22e   :  { %886 = vst.msk [vmem:[#allocation2 + $0xc8] sm:$0xff] %vm860_vm0, %v859_v26  ;;  %v931_v39 = vmax.f32 %v903_v3, %v921_v37  ;;  %v957_v38 = vmax.f32 %v930_v36, %v946_v21 }
 0x230   :  { %v958_v7 = vmax.f32 %v931_v39, %v948_v4 }
 0x232   :  { %v963_v51 = vpack.c.bf16 %v958_v7, %v957_v38  ;;  %v1943_v38 = vld [vmem:[%s2787_s5 + $0xb8] sm:$0xff]  }
 0x233   :  { %v1945_v7 = vld [vmem:[%s2787_s5 + $0x78] sm:$0xff]   ;;  %1880 = vmatpush3.bf16.msra.mxu0 %v1943_v38 }
 0x234   :  { %1748 = vmatmul.mubr.msk.bf16.gmra.mxu1 %vm860_vm0, %v963_v51  ;;  %v1946_v51 = vld [vmem:[%s2787_s5 + $0x38] sm:$0xff]   ;;  %1803 = vmatprep.subr.bf16.mxu1 %v1945_v7 }
 0x235   :  { %1076 = vmatprep.mubr.bf16.mxu1 %v1997_v2  ;;  %v905_v35 = vld [vmem:[#allocation2 + $0xc0] ss:$3 sm:$0x3f]  ;;  %v923_v40 = vld [vmem:[#allocation2 + $0xc1] ss:$3 sm:$0x3f]  ;;  %1881 = vmatprep.subr.bf16.mxu0 %v1998_v22 }
 0x236   :  { %v932_v61 = vmax.f32 %v905_v35, %v923_v40  ;;  %v950_v41 = vld [vmem:[#allocation2 + $0xc2] ss:$3 sm:$0x3f]  ;;  %1804 = vmatpush3.bf16.msra.mxu1 %v1946_v51 }
 0x237   :  { %v1947_v35 = vld [vmem:[%s2787_s5 + $0x70] sm:$0xff]  }
 0x238   :  { %v959_v42 = vmax.f32 %v932_v61, %v950_v41  ;;  %v1944_v40 = vld [vmem:[%s2787_s5 + $0xb0] sm:$0xff]   ;;  %1805 = vmatprep.subr.bf16.mxu1 %v1947_v35  ;;  %v1950_v41 = vld [vmem:[%s2787_s5 + $0x68] sm:$0xff]  }
 0x239   :  { %v1949_v61 = vld [vmem:[%s2787_s5 + $0x30] sm:$0xff]   ;;  %1882 = vmatpush3.bf16.msra.mxu0 %v1944_v40 }
 0x23a   :  { %v964_v46 = vpack.c.bf16 %v959_v42, %v959_v42  ;;  %v1948_v42 = vld [vmem:[%s2787_s5 + $0xa8] sm:$0xff]   ;;  %1883 = vmatprep.subr.bf16.mxu0 %v1998_v22  ;;  %1806 = vmatpush3.bf16.msra.mxu1 %v1949_v61 }
 0x23b   :  { %1807 = vmatprep.subr.bf16.mxu1 %v1950_v41 }
 0x23c   :  { %1749 = vmatmul.mubr.msk.bf16.gmra.mxu1 %vm860_vm0, %v964_v46  ;;  %v1951_v46 = vld [vmem:[%s2787_s5 + $0x28] sm:$0xff]  }
 0x23d   :  { %1884 = vmatpush3.bf16.msra.mxu0 %v1948_v42 }
 0x23e   :  { %1808 = vmatpush3.bf16.msra.mxu1 %v1951_v46  ;;  %1885 = vmatprep.subr.bf16.mxu0 %v1998_v22 }
 0x2b2   :  { %v2537_v29 = vpop.f32.mrf.mxu1 }
 0x2b3   :  { %v1094_v62 = vrot.slane %v2537_v29, 1 }
 0x2b4   :  { %v1040_v49 = vpop.f32.mrf.mxu1 }
 0x2b5   :  { %v1156_v56 = vrot.slane %v1040_v49, 2  ;;  %v1953_v49 = vld [vmem:[%s2787_s5 + $0x60] sm:$0xff]  }
 0x2b6   :  { %v2539_v34 = vpop.f32.mrf.mxu1  ;;  %1809 = vmatprep.subr.bf16.mxu1 %v1953_v49 }
 0x2b7   :  { %v1095_v50 = vrot.slane %v2539_v34, 1 }
 0x2b8   :  { %v1044_v53 = vpop.f32.mrf.mxu1 }
 0x2b9   :  { %v1157_v2 = vrot.slane %v1044_v53, 2  ;;  %v1096_v58 = vsel %vm485_vm14, %v1094_v62, %v1095_v50  ;;  %v1952_v62 = vld [vmem:[%s2787_s5 + $0xa0] sm:$0xff]   ;;  %v1956_v53 = vld [vmem:[%s2787_s5 + $0x58] sm:$0xff]  }
 0x2ba   :  { %1111 = vrot.lane.b32.xlu1 %v1096_v58, %s2000_s27  ;;  %1886 = vmatpush3.bf16.msra.mxu0 %v1952_v62  ;;  %v1958_v58 = vld [vmem:[%s2787_s5 + $0x50] sm:$0xff]  }
 0x2bb   :  { %v2546_v55 = vsel %vm643_vm5, %v1156_v56, %v1157_v2  ;;  %v1955_v56 = vld [vmem:[%s2787_s5 + $0x98] sm:$0xff]   ;;  %1887 = vmatprep.subr.bf16.mxu0 %v1998_v22 }
 0x2be   :  { %1888 = vmatpush3.bf16.msra.mxu0 %v1955_v56 }
 0x2bf   :  { %1889 = vmatprep.subr.bf16.mxu0 %v1998_v22 }
 0x2c4   :  { %v2548_v14 = vpop.f32.mrf.mxu1 }
 0x2c5   :  { %v1097_v60 = vrot.slane %v2548_v14, 1 }
 0x2c6   :  { %v1050_v57 = vpop.f32.mrf.mxu1 }
 0x2c7   :  { %v1159_v0 = vrot.slane %v1050_v57, 2  ;;  %v1098_v24 = vsel %vm485_vm14, %v1095_v50, %v1097_v60  ;;  %v1954_v50 = vld [vmem:[%s2787_s5 + $0x20] sm:$0xff]   ;;  %v1960_v57 = vld [vmem:[%s2787_s5 + $0x10] sm:$0xff]  }
 0x2c8   :  { %v2552_v1 = vpop.f32.mrf.mxu1  ;;  %1113 = vrot.lane.b32.xlu0 %v1098_v24, %s2000_s27  ;;  %1810 = vmatpush3.bf16.msra.mxu1 %v1954_v50 }
 0x2c9   :  { %v1099_v47 = vrot.slane %v2552_v1, 1  ;;  %v2557_v5 = vsel %vm643_vm5, %v1157_v2, %v1159_v0  ;;  %v1957_v2 = vld [vmem:[%s2787_s5 + $0x18] sm:$0xff]   ;;  %1811 = vmatprep.subr.bf16.mxu1 %v1956_v53 }
 0x2ca   :  { %v1054_v59 = vpop.f32.mrf.mxu1 }
 0x2cb   :  { %v1161_v43 = vrot.slane %v1054_v59, 2  ;;  %v1100_v6 = vsel %vm485_vm14, %v1097_v60, %v1099_v47  ;;  %v1959_v60 = vld [vmem:[%s2787_s5 + $0x90] sm:$0xff]  }
 0x2cc   :  { %1115 = vrot.lane.b32.xlu1 %v1100_v6, %s2000_s27  ;;  %1812 = vmatpush3.bf16.msra.mxu1 %v1957_v2  ;;  %v2684_v6 = vld [vmem:[%s2786_s4] ss:$0 sm:$0xff] }
 0x2cd   :  { %v2562_v8 = vsel %vm643_vm5, %v1159_v0, %v1161_v43  ;;  %1813 = vmatprep.subr.bf16.mxu1 %v1958_v58  ;;  %v1962_v0 = vld [vmem:[%s2787_s5 + $0x48] sm:$0xff]   ;;  %1890 = vmatpush3.bf16.msra.mxu0 %v1959_v60 }
 0x2ce   :  { %1891 = vmatprep.subr.bf16.mxu0 %v1998_v22 }
 0x2d0   :  { %1814 = vmatpush3.bf16.msra.mxu1 %v1960_v57 }
 0x2d1   :  { %1815 = vmatprep.subr.bf16.mxu1 %v1962_v0 }
 0x2e2   :  { %v2564_v48 = vpop.f32.mrf.mxu1 }
 0x2e3   :  { %v1101_v9 = vrot.slane %v2564_v48, 1 }
 0x2e4   :  { %v1060_v10 = vpop.f32.mrf.mxu1 }
 0x2e5   :  { %v1163_v12 = vrot.slane %v1060_v10, 2  ;;  %v1102_v13 = vsel %vm485_vm14, %v1099_v47, %v1101_v9  ;;  %v1961_v47 = vld [vmem:[%s2787_s5 + $0x88] sm:$0xff]  }
 0x2e6   :  { %v2568_v15 = vpop.f32.mrf.mxu1  ;;  %1117 = vrot.lane.b32.xlu0 %v1102_v13, %s2000_s27  ;;  %1892 = vmatpush3.bf16.msra.mxu0 %v1961_v47 }
 0x2e7   :  { %v1103_v63 = vrot.slane %v2568_v15, 1  ;;  %v2573_v18 = vsel %vm643_vm5, %v1161_v43, %v1163_v12  ;;  %v1963_v43 = vld [vmem:[%s2787_s5 + $0x8] sm:$0xff]   ;;  %1893 = vmatprep.subr.bf16.mxu0 %v1998_v22 }
 0x2e8   :  { %v1064_v16 = vpop.f32.mrf.mxu1  ;;  %1816 = vmatpush3.bf16.msra.mxu1 %v1963_v43 }
 0x2e9   :  { %v1165_v11 = vrot.slane %v1064_v16, 2  ;;  %v1104_v17 = vsel %vm485_vm14, %v1101_v9, %v1103_v63 }
 0x2ea   :  { %1119 = vrot.lane.b32.xlu1 %v1104_v17, %s2000_s27 }
 0x2eb   :  { %v2578_v52 = vsel %vm643_vm5, %v1163_v12, %v1165_v11 }
 0x2f4   :  { %v2580_v19 = vpop.f32.mrf.mxu1 }
 0x2f5   :  { %v1105_v54 = vrot.slane %v2580_v19, 1 }
 0x2f6   :  { %v1070_v20 = vpop.f32.mrf.mxu1 }
 0x2f7   :  { %v1167_v23 = vrot.slane %v1070_v20, 2  ;;  %v1106_v44 = vsel %vm485_vm14, %v1103_v63, %v1105_v54 }
 0x2f8   :  { %v2584_v25 = vpop.f32.mrf.mxu1  ;;  %1121 = vrot.lane.b32.xlu0 %v1106_v44, %s2000_s27 }
 0x2f9   :  { %v1107_v45 = vrot.slane %v2584_v25, 1  ;;  %v2589_v27 = vsel %vm643_vm5, %v1165_v11, %v1167_v23 }
 0x2fa   :  { %v1074_v28 = vpop.f32.mrf.mxu1 }
 0x2fb   :  { %v1169_v30 = vrot.slane %v1074_v28, 2  ;;  %v1108_v31 = vsel %vm485_vm14, %v1105_v54, %v1107_v45 }
 0x2fc   :  { %1123 = vrot.lane.b32.xlu1 %v1108_v31, %s2000_s27  ;;  %v2593_v32 = vpop.f32.mrf.mxu1 }
 0x2fd   :  { %v1109_v33 = vrot.slane %v2593_v32, 1  ;;  %v2598_v26 = vsel %vm643_vm5, %v1167_v23, %v1169_v30 }
 0x2fe   :  { %v2600_v36 = vpop.f32.mrf.mxu1 }
 0x2ff   :  { %v1171_v3 = vrot.slane %v2600_v36, 2  ;;  %v1110_v37 = vsel %vm485_vm14, %v1107_v45, %v1109_v33 }
 0x300   :  { %1127 = vrot.lane.b32.xlu1 %v1109_v33, %s2000_s27  ;;  %1125 = vrot.lane.b32.xlu0 %v1110_v37, %s2000_s27  ;;  %v1082_v39 = vpop.f32.mrf.mxu1 }
 0x301   :  { %v2609_v21 = vsel %vm643_vm5, %v1169_v30, %v1171_v3 }
 0x302   :  { %v1083_v4 = vpop.f32.mrf.mxu1 }
 0x32c   :  { %v1112_v24 = vpop.permute.xlu1 %1111 }
 0x32d   :  { %v1138_v59 = vadd.f32 %v1112_v24, %v2537_v29  ;;  %v1964_v24 = vld [vmem:[%s2787_s5 + $0x80] sm:$0xff]  }
 0x32e   :  { %1894 = vmatpush3.bf16.msra.mxu0 %v1964_v24 }
 0x32f   :  { %v1182_v9 = vadd.f32 %v2546_v55, %v1138_v59 }
 0x331   :  { %v1198_v10 = vadd.f32 %v2684_v6, %v1182_v9  ;;  %v1966_v9 = vld [vmem:[%s2787_s5] sm:$0xff]  }
 0x333   :  { %v1207_v29 = vmax.f32 %v1198_v10, 0.0 }
 0x335   :  { %1217 = vst.msk [vmem:[#allocation3] sm:$0xff] %vm1216_vm2, %v1207_v29 }
 0x33a   :  { %v1114_v12 = vpop.permute.xlu0 %1113 }
 0x33b   :  { %v1139_v13 = vadd.f32 %v1114_v12, %v2539_v34 }
 0x33d   :  { %v1183_v63 = vadd.f32 %v2557_v5, %v1139_v13 }
 0x33e   :  { %v1116_v16 = vpop.permute.xlu1 %1115 }
 0x33f   :  { %v1199_v11 = vadd.f32 %v2684_v6, %v1183_v63  ;;  %v1140_v55 = vadd.f32 %v1116_v16, %v2548_v14 }
 0x341   :  { %v1208_v17 = vmax.f32 %v1199_v11, 0.0  ;;  %v1184_v54 = vadd.f32 %v2562_v8, %v1140_v55 }
 0x343   :  { %1218 = vst.msk [vmem:[#allocation3 + $0x8] sm:$0xff] %vm1216_vm2, %v1208_v17  ;;  %v1200_v20 = vadd.f32 %v2684_v6, %v1184_v54 }
 0x345   :  { %v1209_v23 = vmax.f32 %v1200_v20, 0.0 }
 0x347   :  { %1219 = vst.msk [vmem:[#allocation3 + $0x10] sm:$0xff] %vm1216_vm2, %v1209_v23 }
 0x358   :  { %v1118_v44 = vpop.permute.xlu0 %1117 }
 0x359   :  { %v1141_v34 = vadd.f32 %v1118_v44, %v2552_v1 }
 0x35b   :  { %v1185_v5 = vadd.f32 %v2573_v18, %v1141_v34 }
 0x35c   :  { %v1120_v45 = vpop.permute.xlu1 %1119 }
 0x35d   :  { %v1201_v28 = vadd.f32 %v2684_v6, %v1185_v5  ;;  %v1142_v14 = vadd.f32 %v1120_v45, %v2564_v48 }
 0x35f   :  { %v1210_v30 = vmax.f32 %v1201_v28, 0.0  ;;  %v1186_v8 = vadd.f32 %v2578_v52, %v1142_v14  ;;  %v1967_v14 = vld [vmem:[%s2789_s7 + $0x38] sm:$0xff]  }
 0x361   :  { %1220 = vst.msk [vmem:[#allocation3 + $0x18] sm:$0xff] %vm1216_vm2, %v1210_v30  ;;  %v1202_v31 = vadd.f32 %v2684_v6, %v1186_v8  ;;  %v1968_v30 = vld [vmem:[%s2789_s7 + $0x30] sm:$0xff]   ;;  %v1969_v8 = vld [vmem:[%s2789_s7 + $0x28] sm:$0xff]  }
 0x363   :  { %v1211_v33 = vmax.f32 %v1202_v31, 0.0  ;;  %v1970_v31 = vld [vmem:[%s2789_s7 + $0x20] sm:$0xff]  }
 0x365   :  { %1221 = vst.msk [vmem:[#allocation3 + $0x20] sm:$0xff] %vm1216_vm2, %v1211_v33  ;;  %v1971_v33 = vld [vmem:[%s2789_s7 + $0x18] sm:$0xff]  }
 0x36a   :  { %v1122_v37 = vpop.permute.xlu0 %1121 }
 0x36b   :  { %v1143_v1 = vadd.f32 %v1122_v37, %v2568_v15  ;;  %v1972_v37 = vld [vmem:[%s2789_s7 + $0x10] sm:$0xff]  }
 0x36c   :  { %v1229_v39 = vld [vmem:[#allocation3] ss:$5 sm:$0xff]  ;;  %v1233_v18 = vld [vmem:[#allocation3 + $0x1] ss:$5 sm:$0xff] }
 0x36d   :  { %v1236_v4 = vmax.f32 %v1229_v39, %v1233_v18  ;;  %v1187_v38 = vadd.f32 %v2589_v27, %v1143_v1  ;;  %v1239_v7 = vld [vmem:[#allocation3 + $0x2] ss:$5 sm:$0xff]  ;;  %v1245_v40 = vld [vmem:[#allocation3 + $0x3] ss:$5 sm:$0xff] }
 0x36e   :  { %v1124_v48 = vpop.permute.xlu1 %1123  ;;  %v1251_v15 = vld [vmem:[#allocation3 + $0x4] ss:$5 sm:$0xff] }
 0x36f   :  { %v1203_v51 = vadd.f32 %v2684_v6, %v1187_v38  ;;  %v1144_v52 = vadd.f32 %v1124_v48, %v2580_v19  ;;  %v1242_v35 = vmax.f32 %v1236_v4, %v1239_v7  ;;  %v1973_v1 = vld [vmem:[%s2789_s7 + $0x8] sm:$0xff]   ;;  %v1974_v39 = vld [vmem:[%s2789_s7] sm:$0xff]  }
 0x371   :  { %v1212_v61 = vmax.f32 %v1203_v51, 0.0  ;;  %v1188_v41 = vadd.f32 %v2598_v26, %v1144_v52  ;;  %v1248_v42 = vmax.f32 %v1242_v35, %v1245_v40  ;;  %v1751_v51 = vld [vmem:[%s2788_s6] ss:$0 sm:$0xff]  ;;  %s1975_s6 = scalar_lea.vmem %s1688_s12, 32 }
 0x372   :  { %v1126_v46 = vpop.permute.xlu0 %1125  ;;  %v1128_v49 = vpop.permute.xlu1 %1127  ;;  %p1976_p0 = scmp.ne.s32.totalorder %s1688_s12, %s1975_s6  ;;  %p1981_p2 = scmp.lt.s32.totalorder %s1975_s6, %s1975_s6 }
 0x373   :  { %1222 = vst.msk [vmem:[#allocation3 + $0x28] sm:$0xff] %vm1216_vm2, %v1212_v61  ;;  %v1204_v62 = vadd.f32 %v2684_v6, %v1188_v41  ;;  %v1145_v27 = vadd.f32 %v1126_v46, %v2584_v25  ;;  %v1146_v50 = vadd.f32 %v1128_v49, %v2593_v32  ;;  %v1254_v53 = vmax.f32 %v1248_v42, %v1251_v15  ;;  %v1776_v49 = vld [vmem:[%s2790_s8] ss:$0 sm:$0xff] }
 0x374   :  { %p1982_p3 = por %p1981_p2, %p1980_p1 }
 0x375   :  { %v1213_v56 = vmax.f32 %v1204_v62, 0.0  ;;  %v1189_v19 = vadd.f32 %v2609_v21, %v1145_v27  ;;  %v1190_v2 = vadd.f32 %v1171_v3, %v1146_v50  ;;  %1256 = vst.msk [vmem:[#allocation4] sm:$0xff] %vm1216_vm2, %v1254_v53 }
 0x376   :  { %p1983_p4 = pnand %p1982_p3, %p1976_p0 }
 0x377   :  { %1223 = vst.msk [vmem:[#allocation3 + $0x30] sm:$0xff] %vm1216_vm2, %v1213_v56  ;;  %v1205_v26 = vadd.f32 %v2684_v6, %v1189_v19  ;;  %v1206_v58 = vadd.f32 %v2684_v6, %v1190_v2  ;;  %v1965_v6 = vld [vmem:[%s2787_s5 + $0x40] sm:$0xff]  }
 0x378   :  { %1817 = vmatprep.subr.bf16.mxu1 %v1965_v6 }
 0x379   :  { %v1214_v60 = vmax.f32 %v1205_v26, 0.0  ;;  %v1215_v25 = vmax.f32 %v1206_v58, 0.0  ;;  %1818 = vmatpush3.bf16.msra.mxu1 %v1966_v9 }
 0x37a   :  { %1899 = vmatprep.subr.bf16.mxu1 %v1998_v22 }
 0x37b   :  { %1224 = vst.msk [vmem:[#allocation3 + $0x38] sm:$0xff] %vm1216_vm2, %v1214_v60 }
 0x37c   :  { %1226 = vst.msk [vmem:[#allocation3 + $0x40] sm:$0xf] %vm1225_vm3, %v1215_v25  ;;  %v1259_v23 = vld [vmem:[#allocation4] ss:$7 sm:$0x3] }
 0x382   :  { %v1247_v3 = vld [vmem:[#allocation3 + $0x2b] ss:$5 sm:$0x3f] }
 0x383   :  { %v1231_v32 = vld [vmem:[#allocation3 + $0x28] ss:$5 sm:$0x3f]  ;;  %v1235_v57 = vld [vmem:[#allocation3 + $0x29] ss:$5 sm:$0x3f] }
 0x384   :  { %v1237_v21 = vmax.f32 %v1231_v32, %v1235_v57  ;;  %v1241_v0 = vld [vmem:[#allocation3 + $0x2a] ss:$5 sm:$0x3f]  ;;  %v1253_v59 = vld [vmem:[#allocation3 + $0x2c] ss:$5 sm:$0x3f] }
 0x386   :  { %v1243_v36 = vmax.f32 %v1237_v21, %v1241_v0 }
 0x388   :  { %v1249_v47 = vmax.f32 %v1243_v36, %v1247_v3 }
 0x38a   :  { %v1255_v43 = vmax.f32 %v1249_v47, %v1253_v59 }
 0x38c   :  { %1258 = vst.msk [vmem:[#allocation4 + $0x8] sm:$0x3f] %vm1257_vm4, %v1255_v43 }
 0x393   :  { %v1269_v10 = vld [vmem:[#allocation4 + $0x5] ss:$7 sm:$0x3]  ;;  %v1261_v29 = vld [vmem:[#allocation4 + $0x1] ss:$7 sm:$0x3] }
 0x394   :  { %1279 = vrot.lane.b32.xlu1 %v1269_v10, %s2000_s27  ;;  %v1265_v12 = vld [vmem:[#allocation4 + $0x3] ss:$7 sm:$0x3]  ;;  %v1267_v16 = vld [vmem:[#allocation4 + $0x4] ss:$7 sm:$0x3] }
 0x395   :  { %v1928_v13 = vpack.i.bf16 %v1261_v29, %v1265_v12  ;;  %v1263_v44 = vld [vmem:[#allocation4 + $0x2] ss:$7 sm:$0x3] }
 0x397   :  { %1929 = vrot.lane.b32.xlu0 %v1928_v13, %s2000_s27 }
 0x406   :  { %v1280_v63 = vpop.permute.xlu1 %1279 }
 0x407   :  { %v1284_v11 = vsel %vm1216_vm2, %v1267_v16, %v1280_v63 }
 0x408   :  { %v1287_v55 = vpack.c.bf16 %v1284_v11, %v1284_v11 }
 0x409   :  { %v1930_v17 = vpop.permute.xlu0 %1929 }
 0x40a   :  { %v1932_v54 = vunpack.i.h.bf16 %v1930_v17  ;;  %v1931_v20 = vunpack.i.l.bf16 %v1930_v17  ;;  %1896 = vmatmul.mubr.bf16.vlgmr.msra.gmra.mxu0 %v1287_v55 }
 0x40c   :  { %v1282_v34 = vsel %vm1216_vm2, %v1259_v23, %v1932_v54  ;;  %v1283_v5 = vsel %vm1216_vm2, %v1263_v44, %v1931_v20 }
 0x40d   :  { %v1285_v45 = vpack.c.bf16 %v1282_v34, %v1282_v34  ;;  %v1286_v28 = vpack.c.bf16 %v1283_v5, %v1283_v5 }
 0x40f   :  { %1519 = vmatprep.mubr.bf16.mxu1 %v1286_v28 }
 0x410   :  { %1520 = vmatmul.mubr.bf16.vlgmr.msra.gmra.mxu1 %v1285_v45 }
 0x411   :  { %1900 = vmatpush3.bf16.msra.mxu1 %v1967_v14  ;;  %1915 = vmatprep.mubr.msk.bf16.mxu1 %vm2001_vm6, %v1998_v22 }
 0x412   :  { %1901 = vmatprep.subr.bf16.mxu1 %v1998_v22 }
 0x415   :  { %1902 = vmatpush3.bf16.msra.mxu1 %v1968_v30 }
 0x416   :  { %1903 = vmatprep.subr.bf16.mxu1 %v1998_v22 }
 0x419   :  { %1904 = vmatpush3.bf16.msra.mxu1 %v1969_v8 }
 0x41a   :  { %1905 = vmatprep.subr.bf16.mxu1 %v1998_v22 }
 0x41d   :  { %1906 = vmatpush3.bf16.msra.mxu1 %v1970_v31 }
 0x41e   :  { %1907 = vmatprep.subr.bf16.mxu1 %v1998_v22 }
 0x421   :  { %1908 = vmatpush3.bf16.msra.mxu1 %v1971_v33 }
 0x422   :  { %1909 = vmatprep.subr.bf16.mxu1 %v1998_v22 }
 0x425   :  { %1910 = vmatpush3.bf16.msra.mxu1 %v1972_v37 }
 0x426   :  { %1911 = vmatprep.subr.bf16.mxu1 %v1998_v22 }
 0x429   :  { %1912 = vmatpush3.bf16.msra.mxu1 %v1973_v1 }
 0x42a   :  { %1913 = vmatprep.subr.bf16.mxu1 %v1998_v22 }
 0x42d   :  { %1914 = vmatpush3.bf16.msra.mxu1 %v1974_v39 }
 0x4ca   :  { %v1561_v18 = vpop.f32.mrf.mxu0 }
 0x4cc   :  { %v1897_v4 = vpop.f32.mrf.mxu0 }
 0x4ce   :  { %v1564_v38 = vpop.f32.mrf.mxu0 }
 0x4d0   :  { %v1819_v7 = vpop.f32.mrf.mxu1  ;;  %v1898_v48 = vpop.f32.mrf.mxu0 }
 0x4d2   :  { %v1820_v52 = vpop.f32.mrf.mxu1 }
 0x4d3   :  { %v1821_v35 = vadd.f32 %v1820_v52, %v1819_v7 }
 0x4d4   :  { %v1822_v40 = vpop.f32.mrf.mxu1 }
 0x4d5   :  { %v1522_v61 = vadd.f32 %v1821_v35, %v1751_v51 }
 0x4d6   :  { %v1823_v41 = vpop.f32.mrf.mxu1 }
 0x4d7   :  { %v1562_v22 = vadd.f32 %v1561_v18, %v1522_v61 }
 0x4d9   :  { %v1567_v42 = vmax.f32 %v1562_v22, 0.0 }
 0x4db   :  { %v1568_v46 = vpack.c.bf16 %v1567_v42, %v1567_v42 }
 0x4dd   :  { %1916 = vmatmul.mubr.bf16.vlgmr.msra.gmra.mxu1 %v1568_v46 }
 0x59d   :  { %v1674_v15 = vpop.f32.mrf.mxu1 }
 0x59e   :  { %v1675_v62 = vadd.f32 %v1776_v49, %v1674_v15 }
 0x59f   :  { %v1917_v27 = vpop.f32.mrf.mxu1 }
 0x5a0   :  { %1680 = vst [vmem:[#allocation5] sm:$0x3] %v1675_v62 }
 0x5a1   :  { %v1677_v50 = vpop.f32.mrf.mxu1 }
 0x5a2   :  { %1986 = shalt.err (!%p1983_p4)
}
 0x5a3   :  { %1690 = dma.vmem_to_hbm [thread:$0]  %s1688_s12, 32, %s2791_s9, [#allocation6]   ;;  %v1918_v53 = vpop.f32.mrf.mxu1 }
 0x5a4   :  { %1995 = dma.done.wait [#allocation6], 32  }
 0x5a5   :  { %1996 = vsyncadd [#allocation6], 4294967264 }
 0x5a6   :  { %1694 = vsyncpa [#allocation6], 1 }

</bundles_post_ra>
